<compile_context>
chip_gen: v5e
topology: v5e:2x2
jax: 0.10.0
libtpu: 0.0.40
codegen_flags: <defaults>
</compile_context>

<pallas_src>
import functools
import math

import numpy as np
import jax
import jax.numpy as jnp
from jax import lax
from jax.experimental import pallas as pl
from jax.experimental.pallas import tpu as pltpu


def _round_up(x, m):
    return ((x + m - 1) // m) * m


def _project_sample_kernel(prm_ref, pts_ref, fmap_ref, feat_ref, bound_ref,
                           *, V, C, H, W, sx, sy, weights_bf16):
    n = pl.program_id(0)
    TP = pts_ref.shape[1]

    X = pts_ref[0:1, :]   # [1, TP] world coords (rows 0..2 of the point block)
    Y = pts_ref[1:2, :]
    Z = pts_ref[2:3, :]

    wcol = lax.broadcasted_iota(jnp.int32, (W, TP), 0)
    hrow = lax.broadcasted_iota(jnp.int32, (H, TP), 0)

    wdt = jnp.bfloat16 if weights_bf16 else jnp.float32

    bound_or = jnp.zeros((1, TP), jnp.float32)   # OR over cameras (as max)
    nan_acc = jnp.zeros((1, TP), jnp.float32)    # any-NaN over (V, C) per point

    for v in range(V):   # V is small & static -> fully unrolled
        row = n * V + v
        # ---- per-camera scalars from SMEM ---------------------------------
        r00 = prm_ref[row, 0];  r01 = prm_ref[row, 1];  r02 = prm_ref[row, 2]
        r10 = prm_ref[row, 3];  r11 = prm_ref[row, 4];  r12 = prm_ref[row, 5]
        r20 = prm_ref[row, 6];  r21 = prm_ref[row, 7];  r22 = prm_ref[row, 8]
        t0 = prm_ref[row, 9];   t1 = prm_ref[row, 10];  t2 = prm_ref[row, 11]
        fx = prm_ref[row, 12];  fy = prm_ref[row, 13]
        cx = prm_ref[row, 14];  cy = prm_ref[row, 15]
        width = prm_ref[row, 16]
        height = prm_ref[row, 17]
        a00 = prm_ref[row, 18]; a01 = prm_ref[row, 19]; a02 = prm_ref[row, 20]
        a10 = prm_ref[row, 21]; a11 = prm_ref[row, 22]; a12 = prm_ref[row, 23]

        # ---- world -> camera -> pixel (pinhole, no distortion), f32 --------
        cam_x = r00 * X + r01 * Y + r02 * Z + t0
        cam_y = r10 * X + r11 * Y + r12 * Z + t1
        cam_z = r20 * X + r21 * Y + r22 * Z + t2
        inv_z = 1.0 / cam_z        # exact divide: keeps the bound compares exact
        px = cam_x * inv_z * fx + cx
        py = cam_y * inv_z * fy + cy

        # ---- in-image bounding mask ----------------------------------------
        bound = ((px >= 0.0) & (py >= 0.0) & (px < width) & (py < height)
                 ).astype(jnp.float32)                               # [1, TP]

        # ---- clamp, affine (image -> feature map), normalize ----------------
        mx = jnp.maximum(width, height)
        pxc = jnp.clip(px, -1.0, mx)
        pyc = jnp.clip(py, -1.0, mx)
        fxp = a00 * pxc + a01 * pyc + a02
        fyp = a10 * pxc + a11 * pyc + a12
        nx = jnp.clip(fxp * sx - 1.0, -1.1, 1.1)   # sx = 2/(fm_w-1)
        ny = jnp.clip(fyp * sy - 1.0, -1.1, 1.1)   # sy = 2/(fm_h-1)

        # ---- bilinear grid_sample (align_corners=True, zeros padding) -------
        ix = (nx + 1.0) * (0.5 * (W - 1.0))
        iy = (ny + 1.0) * (0.5 * (H - 1.0))
        # defensive: NaN coords (cam_z == 0 or NaN points) -> a coordinate that
        # matches no corner, so weights are exactly 0 and the int cast below is
        # well-defined by construction.
        ix = jnp.where(jnp.isnan(ix), -2.0, ix)
        iy = jnp.where(jnp.isnan(iy), -2.0, iy)
        ix0 = jnp.floor(ix)
        iy0 = jnp.floor(iy)
        fxw = ix - ix0                                               # [1, TP]
        fyw = iy - iy0
        x0 = ix0.astype(jnp.int32); x1 = x0 + 1
        y0 = iy0.astype(jnp.int32); y1 = y0 + 1

        # one-hot separable weights; out-of-range corners never match the iota
        # -> zero padding, exactly like grid_sample's padding_mode='zeros'.
        wx = (jnp.where(wcol == x0, 1.0 - fxw, 0.0)
              + jnp.where(wcol == x1, fxw, 0.0)).astype(wdt)         # [W, TP]
        wy = (jnp.where(hrow == y0, 1.0 - fyw, 0.0)
              + jnp.where(hrow == y1, fyw, 0.0)).astype(wdt)         # [H, TP]
        wc = (wy[:, None, :] * wx[None, :, :]).reshape(H * W, TP)
        wc = wc.astype(jnp.bfloat16)                                 # no-op on v6e/v7x

        # fused one-hot MXU matmul: feat[C,TP] = fm[C,H*W] @ wc[H*W,TP]
        fm = fmap_ref[v * C:(v + 1) * C, :].astype(jnp.bfloat16)
        feat = jnp.dot(fm, wc, preferred_element_type=jnp.float32)   # [C, TP]
        feat = feat * bound

        nan_acc = jnp.maximum(
            nan_acc,
            jnp.max(jnp.where(jnp.isnan(feat), 1.0, 0.0), axis=0, keepdims=True))
        bound_or = jnp.maximum(bound_or, bound)
        feat_ref[v * C:(v + 1) * C, :] = feat

    # ---- torch tail (discard_nan=False): zero every view/channel of a NaN
    # point and clear its bound, all in-kernel ------------------------------
    is_nan = nan_acc > 0.0                                           # [1, TP]
    for v in range(V):
        cur = feat_ref[v * C:(v + 1) * C, :]
        feat_ref[v * C:(v + 1) * C, :] = jnp.where(is_nan, 0.0, cur)
    bound_out = jnp.where(is_nan, 0.0, bound_or)
    bound_ref[...] = jnp.broadcast_to(bound_out, (8, TP))


def non_grid_project_forward(feature_maps, cam_params, multiview_sample_points,
                             feature_map_size, *, p_tile=512):
    """feature_maps: [N,V,C,H,W] f32; cam_params: [N,V,32];
    multiview_sample_points: list of [P_i, 5]."""
    N, V, C, H, W = feature_maps.shape
    Ps = [int(p.shape[0]) for p in multiview_sample_points]
    TP = min(_round_up(max(Ps), 128), p_tile)      # lane-tile, multiple of 128
    Pmax = _round_up(max(Ps), TP)
    n_pt = Pmax // TP

    # points -> [N*8, Pmax]  (rows 8i..8i+2 hold x,y,z^T; padded lanes = 0)
    blocks = []
    for p in multiview_sample_points:
        blk = jnp.zeros((8, Pmax), jnp.float32)
        blk = blk.at[:3, :p.shape[0]].set(jnp.asarray(p[:, :3], jnp.float32).T)
        blocks.append(blk)
    pts_stacked = jnp.concatenate(blocks, axis=0)

    params_flat = jnp.asarray(cam_params, jnp.float32).reshape(N * V, -1)
    # lane-dense [N*V*C, H*W] view (contiguous-merge reshape, no copy); the
    # bf16 cast for the MXU happens in-kernel so no separate XLA cast pass.
    fmap_flat = feature_maps.reshape(N * V * C, H * W)

    sx = 2.0 / (float(feature_map_size[0]) - 1.0)
    sy = 2.0 / (float(feature_map_size[1]) - 1.0)

    kind = jax.devices()[0].device_kind.lower()
    weights_bf16 = ("v6" in kind) or ("v7" in kind)   # bf16 VALU available

    kernel = functools.partial(_project_sample_kernel, V=V, C=C, H=H, W=W,
                               sx=sx, sy=sy, weights_bf16=weights_bf16)

    feat_flat, bound_flat = pl.pallas_call(
        kernel,
        grid=(N, n_pt),
        in_specs=[
            pl.BlockSpec(memory_space=pltpu.MemorySpace.SMEM),          # params
            pl.BlockSpec((8, TP), lambda n, p: (n, p)),                 # points
            pl.BlockSpec((V * C, H * W), lambda n, p: (n, 0)),          # fmaps
        ],
        out_specs=[
            pl.BlockSpec((V * C, TP), lambda n, p: (n, p)),             # feat
            pl.BlockSpec((8, TP), lambda n, p: (n, p)),                 # bound
        ],
        out_shape=[jax.ShapeDtypeStruct((N * V * C, Pmax), jnp.float32),
                   jax.ShapeDtypeStruct((N * 8, Pmax), jnp.float32)],
        compiler_params=pltpu.CompilerParams(
            dimension_semantics=("parallel", "parallel"),
            vmem_limit_bytes=32 * 1024 * 1024),
    )(params_flat, pts_stacked, fmap_flat)

    feat_all = feat_flat.reshape(N, V, C, Pmax)
    bound_all = bound_flat.reshape(N, 8, Pmax)[:, 0, :] > 0.0        # [N, Pmax]

    # NaN filtering and the per-camera bound OR already happened in-kernel;
    # only the [V,C,P] -> [P,V,C] permute and per-item static slices remain.
    feat_pvc = jnp.transpose(feat_all, (0, 3, 1, 2))                 # [N,Pmax,V,C]

    multiview_features = [feat_pvc[i, :Ps[i]] for i in range(N)]
    bounding = [bound_all[i, :Ps[i]] for i in range(N)]
    return multiview_features, bounding, multiview_sample_points


# ---------------------- plain-jnp reference (for verification) --------------
def _ref_project_one(fm_i, params_i, pts_i, fm_size):
    V, C, H, W = fm_i.shape
    feats, bounds = [], []
    for v in range(V):
        p = params_i[v]
        r = p[0:9]; T = p[9:12]; f = p[12:14]; c = p[14:16]
        width, height = p[16], p[17]
        a = p[18:24]
        X, Y, Z = pts_i[:, 0], pts_i[:, 1], pts_i[:, 2]
        cxm = r[0] * X + r[1] * Y + r[2] * Z + T[0]
        cym = r[3] * X + r[4] * Y + r[5] * Z + T[1]
        czm = r[6] * X + r[7] * Y + r[8] * Z + T[2]
        inv_z = 1.0 / czm
        px = cxm * inv_z * f[0] + c[0]
        py = cym * inv_z * f[1] + c[1]
        bnd = ((px >= 0) & (py >= 0) & (px < width) & (py < height)
               ).astype(jnp.float32)
        mx = jnp.maximum(width, height)
        pxc = jnp.clip(px, -1.0, mx)
        pyc = jnp.clip(py, -1.0, mx)
        fxp = a[0] * pxc + a[1] * pyc + a[2]
        fyp = a[3] * pxc + a[4] * pyc + a[5]
        nx = jnp.clip(fxp / (fm_size[0] - 1.0) * 2.0 - 1.0, -1.1, 1.1)
        ny = jnp.clip(fyp / (fm_size[1] - 1.0) * 2.0 - 1.0, -1.1, 1.1)
        ix = (nx + 1.0) * 0.5 * (W - 1.0)
        iy = (ny + 1.0) * 0.5 * (H - 1.0)
        x0 = jnp.floor(ix).astype(jnp.int32); x1 = x0 + 1
        y0 = jnp.floor(iy).astype(jnp.int32); y1 = y0 + 1
        fxw = ix - jnp.floor(ix); fyw = iy - jnp.floor(iy)

        def g(yy, xx):
            valid = ((xx >= 0) & (xx < W) & (yy >= 0) & (yy < H)
                     ).astype(jnp.float32)
            vals = fm_i[v][:, jnp.clip(yy, 0, H - 1), jnp.clip(xx, 0, W - 1)]
            return vals * valid[None]

        out = (g(y0, x0) * ((1 - fxw) * (1 - fyw))[None]
               + g(y0, x1) * (fxw * (1 - fyw))[None]
               + g(y1, x0) * ((1 - fxw) * fyw)[None]
               + g(y1, x1) * (fxw * fyw)[None])
        feats.append(out * bnd[None])
        bounds.append(bnd)
    return jnp.stack(feats), jnp.stack(bounds)


def make_camera_params(num_cameras, img_w, img_h, fm_w, fm_h):
    params = []
    for v in range(num_cameras):
        ang = 0.2 * math.pi * v / max(num_cameras, 1)
        R = np.array([[math.cos(ang), 0.0, math.sin(ang)],
                      [0.0, 1.0, 0.0],
                      [-math.sin(ang), 0.0, math.cos(ang)]], dtype=np.float32)
        T = np.array([0.1 * v, -0.05 * v, 5.0 + 0.5 * v], dtype=np.float32)
        f = np.array([300.0, 300.0], dtype=np.float32)
        c = np.array([img_w / 2.0, img_h / 2.0], dtype=np.float32)
        # affine image -> feature map (get_affine_transform with rot=0,
        # full-image scale): uniform scale + centering, translation = 0 here.
        trans = np.array([[fm_w / img_w, 0.0, 0.0],
                          [0.0, fm_h / img_h, 0.0]], dtype=np.float32)
        p = np.zeros((32,), dtype=np.float32)
        p[0:9] = R.reshape(-1)
        p[9:12] = T
        p[12:14] = f
        p[14:16] = c
        p[16] = img_w
        p[17] = img_h
        p[18:24] = trans.reshape(-1)
        params.append(p)
    return jnp.asarray(np.stack(params))


if __name__ == "__main__":
    N, V, C, H, W = 2, 3, 32, 16, 16
    IMG_W = IMG_H = 512.0
    fm_size = (float(W), float(H))   # feature_map_size buffer = [w, h]

    key = jax.random.PRNGKey(0)
    k_fm, k_pts = jax.random.split(key)
    feature_maps = jax.random.normal(k_fm, (N, V, C, H, W), jnp.float32)

    Ps = [128, 64]
    pts_keys = jax.random.split(k_pts, N)
    multiview_sample_points = [
        jnp.concatenate(
            [jax.random.uniform(pts_keys[i], (Ps[i], 3), jnp.float32,
                                -2.0, 2.0),
             jax.random.uniform(jax.random.fold_in(pts_keys[i], 1),
                                (Ps[i], 2), jnp.float32, 0.0, 1.0)],
            axis=1)
        for i in range(N)]

    base = make_camera_params(V, IMG_W, IMG_H, W, H)
    cam_params = jnp.stack([base, base.at[:, 9].add(0.2)])   # [N, V, 32]

    feats, bounds, pts_out = non_grid_project_forward(
        feature_maps, cam_params, multiview_sample_points, fm_size)
    jax.block_until_ready(feats)
    jax.block_until_ready(bounds)

    ok = True
    for i in range(N):
        ref_feat, ref_bound = _ref_project_one(
            feature_maps[i], cam_params[i], multiview_sample_points[i],
            fm_size)
        ref_feat_pvc = jnp.transpose(ref_feat, (2, 0, 1))
        ref_bnd = ref_bound.sum(axis=0) > 0
        ok &= bool(jnp.allclose(feats[i], ref_feat_pvc, atol=6e-2, rtol=2e-2))
        ok &= bool(jnp.array_equal(bounds[i], ref_bnd))
    assert ok, "kernel output does not match jnp reference"
    print("KERNEL_OK")
</pallas_src>

<mosaic_0001>
module attributes {stable_mosaic.version = 11 : i64} {
  func.func @_project_sample_kernel(%arg0: i32, %arg1: i32, %arg2: memref<6x32xf32, #tpu.memory_space<smem>>, %arg3: memref<8x128xf32, #tpu.memory_space<vmem>>, %arg4: memref<96x256xf32, #tpu.memory_space<vmem>>, %arg5: memref<96x128xf32, #tpu.memory_space<vmem>>, %arg6: memref<8x128xf32, #tpu.memory_space<vmem>>) attributes {dimension_semantics = [#tpu.dimension_semantics<parallel>, #tpu.dimension_semantics<parallel>], iteration_bounds = array<i64: 2, 1>, scalar_prefetch = 0 : i64, scratch_operands = 0 : i64, tpu.core_type = #tpu.core_type<tc>, window_params = [{transform_indices = @transform_0, window_bounds = array<i64: 6, 32>}, {transform_indices = @transform_1, window_bounds = array<i64: 8, 128>}, {transform_indices = @transform_2, window_bounds = array<i64: 96, 256>}, {transform_indices = @transform_3, window_bounds = array<i64: 96, 128>}, {transform_indices = @transform_4, window_bounds = array<i64: 8, 128>}]} {
    %c0 = arith.constant 0 : index
    %c0_0 = arith.constant 0 : index
    %0 = vector.load %arg3[%c0, %c0_0] : memref<8x128xf32, #tpu.memory_space<vmem>>, vector<1x128xf32>
    %c1 = arith.constant 1 : index
    %c0_1 = arith.constant 0 : index
    %1 = vector.load %arg3[%c1, %c0_1] : memref<8x128xf32, #tpu.memory_space<vmem>>, vector<1x128xf32>
    %c2 = arith.constant 2 : index
    %c0_2 = arith.constant 0 : index
    %2 = vector.load %arg3[%c2, %c0_2] : memref<8x128xf32, #tpu.memory_space<vmem>>, vector<1x128xf32>
    %3 = tpu.iota {dimensions = array<i32: 0>} : vector<16x128xi32>
    %4 = tpu.iota {dimensions = array<i32: 0>} : vector<16x128xi32>
    %cst = arith.constant 0.000000e+00 : f32
    %5 = vector.broadcast %cst : f32 to vector<1x128xf32>
    %cst_3 = arith.constant 0.000000e+00 : f32
    %6 = vector.broadcast %cst_3 : f32 to vector<1x128xf32>
    %c3_i32 = arith.constant 3 : i32
    %7 = arith.muli %arg0, %c3_i32 : i32
    %c0_i32 = arith.constant 0 : i32
    %8 = arith.addi %7, %c0_i32 : i32
    %9 = arith.index_cast %8 : i32 to index
    %c0_4 = arith.constant 0 : index
    %10 = memref.load %arg2[%9, %c0_4] : memref<6x32xf32, #tpu.memory_space<smem>>
    %11 = arith.index_cast %8 : i32 to index
    %c1_5 = arith.constant 1 : index
    %12 = memref.load %arg2[%11, %c1_5] : memref<6x32xf32, #tpu.memory_space<smem>>
    %13 = arith.index_cast %8 : i32 to index
    %c2_6 = arith.constant 2 : index
    %14 = memref.load %arg2[%13, %c2_6] : memref<6x32xf32, #tpu.memory_space<smem>>
    %15 = arith.index_cast %8 : i32 to index
    %c3 = arith.constant 3 : index
    %16 = memref.load %arg2[%15, %c3] : memref<6x32xf32, #tpu.memory_space<smem>>
    %17 = arith.index_cast %8 : i32 to index
    %c4 = arith.constant 4 : index
    %18 = memref.load %arg2[%17, %c4] : memref<6x32xf32, #tpu.memory_space<smem>>
    %19 = arith.index_cast %8 : i32 to index
    %c5 = arith.constant 5 : index
    %20 = memref.load %arg2[%19, %c5] : memref<6x32xf32, #tpu.memory_space<smem>>
    %21 = arith.index_cast %8 : i32 to index
    %c6 = arith.constant 6 : index
    %22 = memref.load %arg2[%21, %c6] : memref<6x32xf32, #tpu.memory_space<smem>>
    %23 = arith.index_cast %8 : i32 to index
    %c7 = arith.constant 7 : index
    %24 = memref.load %arg2[%23, %c7] : memref<6x32xf32, #tpu.memory_space<smem>>
    %25 = arith.index_cast %8 : i32 to index
    %c8 = arith.constant 8 : index
    %26 = memref.load %arg2[%25, %c8] : memref<6x32xf32, #tpu.memory_space<smem>>
    %27 = arith.index_cast %8 : i32 to index
    %c9 = arith.constant 9 : index
    %28 = memref.load %arg2[%27, %c9] : memref<6x32xf32, #tpu.memory_space<smem>>
    %29 = arith.index_cast %8 : i32 to index
    %c10 = arith.constant 10 : index
    %30 = memref.load %arg2[%29, %c10] : memref<6x32xf32, #tpu.memory_space<smem>>
    %31 = arith.index_cast %8 : i32 to index
    %c11 = arith.constant 11 : index
    %32 = memref.load %arg2[%31, %c11] : memref<6x32xf32, #tpu.memory_space<smem>>
    %33 = arith.index_cast %8 : i32 to index
    %c12 = arith.constant 12 : index
    %34 = memref.load %arg2[%33, %c12] : memref<6x32xf32, #tpu.memory_space<smem>>
    %35 = arith.index_cast %8 : i32 to index
    %c13 = arith.constant 13 : index
    %36 = memref.load %arg2[%35, %c13] : memref<6x32xf32, #tpu.memory_space<smem>>
    %37 = arith.index_cast %8 : i32 to index
    %c14 = arith.constant 14 : index
    %38 = memref.load %arg2[%37, %c14] : memref<6x32xf32, #tpu.memory_space<smem>>
    %39 = arith.index_cast %8 : i32 to index
    %c15 = arith.constant 15 : index
    %40 = memref.load %arg2[%39, %c15] : memref<6x32xf32, #tpu.memory_space<smem>>
    %41 = arith.index_cast %8 : i32 to index
    %c16 = arith.constant 16 : index
    %42 = memref.load %arg2[%41, %c16] : memref<6x32xf32, #tpu.memory_space<smem>>
    %43 = arith.index_cast %8 : i32 to index
    %c17 = arith.constant 17 : index
    %44 = memref.load %arg2[%43, %c17] : memref<6x32xf32, #tpu.memory_space<smem>>
    %45 = arith.index_cast %8 : i32 to index
    %c18 = arith.constant 18 : index
    %46 = memref.load %arg2[%45, %c18] : memref<6x32xf32, #tpu.memory_space<smem>>
    %47 = arith.index_cast %8 : i32 to index
    %c19 = arith.constant 19 : index
    %48 = memref.load %arg2[%47, %c19] : memref<6x32xf32, #tpu.memory_space<smem>>
    %49 = arith.index_cast %8 : i32 to index
    %c20 = arith.constant 20 : index
    %50 = memref.load %arg2[%49, %c20] : memref<6x32xf32, #tpu.memory_space<smem>>
    %51 = arith.index_cast %8 : i32 to index
    %c21 = arith.constant 21 : index
    %52 = memref.load %arg2[%51, %c21] : memref<6x32xf32, #tpu.memory_space<smem>>
    %53 = arith.index_cast %8 : i32 to index
    %c22 = arith.constant 22 : index
    %54 = memref.load %arg2[%53, %c22] : memref<6x32xf32, #tpu.memory_space<smem>>
    %55 = arith.index_cast %8 : i32 to index
    %c23 = arith.constant 23 : index
    %56 = memref.load %arg2[%55, %c23] : memref<6x32xf32, #tpu.memory_space<smem>>
    %57 = vector.broadcast %10 : f32 to vector<1x128xf32>
    %58 = arith.mulf %57, %0 : vector<1x128xf32>
    %59 = vector.broadcast %12 : f32 to vector<1x128xf32>
    %60 = arith.mulf %59, %1 : vector<1x128xf32>
    %61 = arith.addf %58, %60 : vector<1x128xf32>
    %62 = vector.broadcast %14 : f32 to vector<1x128xf32>
    %63 = arith.mulf %62, %2 : vector<1x128xf32>
    %64 = arith.addf %61, %63 : vector<1x128xf32>
    %65 = vector.broadcast %28 : f32 to vector<1x128xf32>
    %66 = arith.addf %64, %65 : vector<1x128xf32>
    %67 = vector.broadcast %16 : f32 to vector<1x128xf32>
    %68 = arith.mulf %67, %0 : vector<1x128xf32>
    %69 = vector.broadcast %18 : f32 to vector<1x128xf32>
    %70 = arith.mulf %69, %1 : vector<1x128xf32>
    %71 = arith.addf %68, %70 : vector<1x128xf32>
    %72 = vector.broadcast %20 : f32 to vector<1x128xf32>
    %73 = arith.mulf %72, %2 : vector<1x128xf32>
    %74 = arith.addf %71, %73 : vector<1x128xf32>
    %75 = vector.broadcast %30 : f32 to vector<1x128xf32>
    %76 = arith.addf %74, %75 : vector<1x128xf32>
    %77 = vector.broadcast %22 : f32 to vector<1x128xf32>
    %78 = arith.mulf %77, %0 : vector<1x128xf32>
    %79 = vector.broadcast %24 : f32 to vector<1x128xf32>
    %80 = arith.mulf %79, %1 : vector<1x128xf32>
    %81 = arith.addf %78, %80 : vector<1x128xf32>
    %82 = vector.broadcast %26 : f32 to vector<1x128xf32>
    %83 = arith.mulf %82, %2 : vector<1x128xf32>
    %84 = arith.addf %81, %83 : vector<1x128xf32>
    %85 = vector.broadcast %32 : f32 to vector<1x128xf32>
    %86 = arith.addf %84, %85 : vector<1x128xf32>
    %cst_7 = arith.constant 1.000000e+00 : f32
    %87 = vector.broadcast %cst_7 : f32 to vector<1x128xf32>
    %88 = arith.divf %87, %86 : vector<1x128xf32>
    %89 = arith.mulf %66, %88 : vector<1x128xf32>
    %90 = vector.broadcast %34 : f32 to vector<1x128xf32>
    %91 = arith.mulf %89, %90 : vector<1x128xf32>
    %92 = vector.broadcast %38 : f32 to vector<1x128xf32>
    %93 = arith.addf %91, %92 : vector<1x128xf32>
    %94 = arith.mulf %76, %88 : vector<1x128xf32>
    %95 = vector.broadcast %36 : f32 to vector<1x128xf32>
    %96 = arith.mulf %94, %95 : vector<1x128xf32>
    %97 = vector.broadcast %40 : f32 to vector<1x128xf32>
    %98 = arith.addf %96, %97 : vector<1x128xf32>
    %cst_8 = arith.constant 0.000000e+00 : f32
    %99 = vector.broadcast %cst_8 : f32 to vector<1x128xf32>
    %100 = arith.cmpf oge, %93, %99 : vector<1x128xf32>
    %cst_9 = arith.constant 0.000000e+00 : f32
    %101 = vector.broadcast %cst_9 : f32 to vector<1x128xf32>
    %102 = arith.cmpf oge, %98, %101 : vector<1x128xf32>
    %103 = arith.andi %100, %102 : vector<1x128xi1>
    %104 = vector.broadcast %42 : f32 to vector<1x128xf32>
    %105 = arith.cmpf olt, %93, %104 : vector<1x128xf32>
    %106 = arith.andi %103, %105 : vector<1x128xi1>
    %107 = vector.broadcast %44 : f32 to vector<1x128xf32>
    %108 = arith.cmpf olt, %98, %107 : vector<1x128xf32>
    %109 = arith.andi %106, %108 : vector<1x128xi1>
    %110 = arith.extui %109 : vector<1x128xi1> to vector<1x128xi32>
    %111 = arith.sitofp %110 : vector<1x128xi32> to vector<1x128xf32>
    %112 = arith.maximumf %42, %44 : f32
    %cst_10 = arith.constant -1.000000e+00 : f32
    %113 = vector.broadcast %cst_10 : f32 to vector<1x128xf32>
    %114 = arith.maximumf %113, %93 : vector<1x128xf32>
    %115 = vector.broadcast %112 : f32 to vector<1x128xf32>
    %116 = arith.minimumf %115, %114 : vector<1x128xf32>
    %cst_11 = arith.constant -1.000000e+00 : f32
    %117 = vector.broadcast %cst_11 : f32 to vector<1x128xf32>
    %118 = arith.maximumf %117, %98 : vector<1x128xf32>
    %119 = vector.broadcast %112 : f32 to vector<1x128xf32>
    %120 = arith.minimumf %119, %118 : vector<1x128xf32>
    %121 = vector.broadcast %46 : f32 to vector<1x128xf32>
    %122 = arith.mulf %121, %116 : vector<1x128xf32>
    %123 = vector.broadcast %48 : f32 to vector<1x128xf32>
    %124 = arith.mulf %123, %120 : vector<1x128xf32>
    %125 = arith.addf %122, %124 : vector<1x128xf32>
    %126 = vector.broadcast %50 : f32 to vector<1x128xf32>
    %127 = arith.addf %125, %126 : vector<1x128xf32>
    %128 = vector.broadcast %52 : f32 to vector<1x128xf32>
    %129 = arith.mulf %128, %116 : vector<1x128xf32>
    %130 = vector.broadcast %54 : f32 to vector<1x128xf32>
    %131 = arith.mulf %130, %120 : vector<1x128xf32>
    %132 = arith.addf %129, %131 : vector<1x128xf32>
    %133 = vector.broadcast %56 : f32 to vector<1x128xf32>
    %134 = arith.addf %132, %133 : vector<1x128xf32>
    %cst_12 = arith.constant 0.13333334 : f32
    %135 = vector.broadcast %cst_12 : f32 to vector<1x128xf32>
    %136 = arith.mulf %127, %135 : vector<1x128xf32>
    %cst_13 = arith.constant 1.000000e+00 : f32
    %137 = vector.broadcast %cst_13 : f32 to vector<1x128xf32>
    %138 = arith.subf %136, %137 : vector<1x128xf32>
    %cst_14 = arith.constant -1.100000e+00 : f32
    %cst_15 = arith.constant 1.100000e+00 : f32
    %139 = vector.broadcast %cst_14 : f32 to vector<1x128xf32>
    %140 = arith.maximumf %139, %138 : vector<1x128xf32>
    %141 = vector.broadcast %cst_15 : f32 to vector<1x128xf32>
    %142 = arith.minimumf %141, %140 : vector<1x128xf32>
    %cst_16 = arith.constant 0.13333334 : f32
    %143 = vector.broadcast %cst_16 : f32 to vector<1x128xf32>
    %144 = arith.mulf %134, %143 : vector<1x128xf32>
    %cst_17 = arith.constant 1.000000e+00 : f32
    %145 = vector.broadcast %cst_17 : f32 to vector<1x128xf32>
    %146 = arith.subf %144, %145 : vector<1x128xf32>
    %cst_18 = arith.constant -1.100000e+00 : f32
    %cst_19 = arith.constant 1.100000e+00 : f32
    %147 = vector.broadcast %cst_18 : f32 to vector<1x128xf32>
    %148 = arith.maximumf %147, %146 : vector<1x128xf32>
    %149 = vector.broadcast %cst_19 : f32 to vector<1x128xf32>
    %150 = arith.minimumf %149, %148 : vector<1x128xf32>
    %cst_20 = arith.constant 1.000000e+00 : f32
    %151 = vector.broadcast %cst_20 : f32 to vector<1x128xf32>
    %152 = arith.addf %142, %151 : vector<1x128xf32>
    %cst_21 = arith.constant 7.500000e+00 : f32
    %153 = vector.broadcast %cst_21 : f32 to vector<1x128xf32>
    %154 = arith.mulf %152, %153 : vector<1x128xf32>
    %cst_22 = arith.constant 1.000000e+00 : f32
    %155 = vector.broadcast %cst_22 : f32 to vector<1x128xf32>
    %156 = arith.addf %150, %155 : vector<1x128xf32>
    %cst_23 = arith.constant 7.500000e+00 : f32
    %157 = vector.broadcast %cst_23 : f32 to vector<1x128xf32>
    %158 = arith.mulf %156, %157 : vector<1x128xf32>
    %159 = arith.cmpf one, %154, %154 : vector<1x128xf32>
    %cst_24 = arith.constant -2.000000e+00 : f32
    %160 = vector.broadcast %cst_24 : f32 to vector<1x128xf32>
    %161 = arith.select %159, %160, %154 : vector<1x128xi1>, vector<1x128xf32>
    %162 = arith.cmpf one, %158, %158 : vector<1x128xf32>
    %cst_25 = arith.constant -2.000000e+00 : f32
    %163 = vector.broadcast %cst_25 : f32 to vector<1x128xf32>
    %164 = arith.select %162, %163, %158 : vector<1x128xi1>, vector<1x128xf32>
    %165 = math.floor %161 : vector<1x128xf32>
    %166 = math.floor %164 : vector<1x128xf32>
    %167 = arith.subf %161, %165 : vector<1x128xf32>
    %168 = arith.subf %164, %166 : vector<1x128xf32>
    %169 = arith.fptosi %165 : vector<1x128xf32> to vector<1x128xi32>
    %c1_i32 = arith.constant 1 : i32
    %170 = vector.broadcast %c1_i32 : i32 to vector<1x128xi32>
    %171 = arith.addi %169, %170 : vector<1x128xi32>
    %172 = arith.fptosi %166 : vector<1x128xf32> to vector<1x128xi32>
    %c1_i32_26 = arith.constant 1 : i32
    %173 = vector.broadcast %c1_i32_26 : i32 to vector<1x128xi32>
    %174 = arith.addi %172, %173 : vector<1x128xi32>
    %175 = vector.broadcast %169 : vector<1x128xi32> to vector<16x128xi32>
    %176 = arith.cmpi eq, %3, %175 : vector<16x128xi32>
    %cst_27 = arith.constant 1.000000e+00 : f32
    %177 = vector.broadcast %cst_27 : f32 to vector<1x128xf32>
    %178 = arith.subf %177, %167 : vector<1x128xf32>
    %cst_28 = arith.constant 0.000000e+00 : f32
    %179 = vector.shape_cast %178 : vector<1x128xf32> to vector<1x128xf32>
    %180 = vector.broadcast %179 : vector<1x128xf32> to vector<16x128xf32>
    %181 = vector.broadcast %cst_28 : f32 to vector<16x128xf32>
    %182 = arith.select %176, %180, %181 : vector<16x128xi1>, vector<16x128xf32>
    %183 = vector.broadcast %171 : vector<1x128xi32> to vector<16x128xi32>
    %184 = arith.cmpi eq, %3, %183 : vector<16x128xi32>
    %cst_29 = arith.constant 0.000000e+00 : f32
    %185 = vector.shape_cast %167 : vector<1x128xf32> to vector<1x128xf32>
    %186 = vector.broadcast %185 : vector<1x128xf32> to vector<16x128xf32>
    %187 = vector.broadcast %cst_29 : f32 to vector<16x128xf32>
    %188 = arith.select %184, %186, %187 : vector<16x128xi1>, vector<16x128xf32>
    %189 = arith.addf %182, %188 : vector<16x128xf32>
    %190 = vector.broadcast %172 : vector<1x128xi32> to vector<16x128xi32>
    %191 = arith.cmpi eq, %4, %190 : vector<16x128xi32>
    %cst_30 = arith.constant 1.000000e+00 : f32
    %192 = vector.broadcast %cst_30 : f32 to vector<1x128xf32>
    %193 = arith.subf %192, %168 : vector<1x128xf32>
    %cst_31 = arith.constant 0.000000e+00 : f32
    %194 = vector.shape_cast %193 : vector<1x128xf32> to vector<1x128xf32>
    %195 = vector.broadcast %194 : vector<1x128xf32> to vector<16x128xf32>
    %196 = vector.broadcast %cst_31 : f32 to vector<16x128xf32>
    %197 = arith.select %191, %195, %196 : vector<16x128xi1>, vector<16x128xf32>
    %198 = vector.broadcast %174 : vector<1x128xi32> to vector<16x128xi32>
    %199 = arith.cmpi eq, %4, %198 : vector<16x128xi32>
    %cst_32 = arith.constant 0.000000e+00 : f32
    %200 = vector.shape_cast %168 : vector<1x128xf32> to vector<1x128xf32>
    %201 = vector.broadcast %200 : vector<1x128xf32> to vector<16x128xf32>
    %202 = vector.broadcast %cst_32 : f32 to vector<16x128xf32>
    %203 = arith.select %199, %201, %202 : vector<16x128xi1>, vector<16x128xf32>
    %204 = arith.addf %197, %203 : vector<16x128xf32>
    %205 = vector.shape_cast %204 : vector<16x128xf32> to vector<16x1x128xf32>
    %206 = vector.shape_cast %189 : vector<16x128xf32> to vector<1x16x128xf32>
    %207 = vector.broadcast %205 : vector<16x1x128xf32> to vector<16x16x128xf32>
    %208 = vector.broadcast %206 : vector<1x16x128xf32> to vector<16x16x128xf32>
    %209 = arith.mulf %207, %208 : vector<16x16x128xf32>
    %210 = vector.shape_cast %209 : vector<16x16x128xf32> to vector<256x128xf32>
    %211 = arith.truncf %210 : vector<256x128xf32> to vector<256x128xbf16>
    %c0_33 = arith.constant 0 : index
    %c0_34 = arith.constant 0 : index
    %212 = vector.load %arg4[%c0_33, %c0_34] : memref<96x256xf32, #tpu.memory_space<vmem>>, vector<32x256xf32>
    %213 = arith.truncf %212 : vector<32x256xf32> to vector<32x256xbf16>
    %cst_35 = arith.constant dense<0.000000e+00> : vector<32x128xf32>
    %214 = tpu.matmul %213, %211, %cst_35 {dimension_numbers = #tpu.dot_dimension_numbers<[1], [0], [0], [1], [0, 0, 1, 1], [], []>} : vector<32x256xbf16>, vector<256x128xbf16>, vector<32x128xf32> -> vector<32x128xf32>
    %215 = vector.broadcast %111 : vector<1x128xf32> to vector<32x128xf32>
    %216 = arith.mulf %214, %215 : vector<32x128xf32>
    %217 = arith.cmpf one, %216, %216 : vector<32x128xf32>
    %cst_36 = arith.constant 1.000000e+00 : f32
    %cst_37 = arith.constant 0.000000e+00 : f32
    %218 = vector.broadcast %cst_36 : f32 to vector<32x128xf32>
    %219 = vector.broadcast %cst_37 : f32 to vector<32x128xf32>
    %220 = arith.select %217, %218, %219 : vector<32x128xi1>, vector<32x128xf32>
    %cst_38 = arith.constant dense<0xFF800000> : vector<128xf32>
    %221 = vector.multi_reduction <maximumf>, %220, %cst_38 [0] : vector<32x128xf32> to vector<128xf32>
    %222 = vector.shape_cast %221 : vector<128xf32> to vector<1x128xf32>
    %223 = arith.maximumf %6, %222 : vector<1x128xf32>
    %224 = arith.maximumf %5, %111 : vector<1x128xf32>
    %c0_39 = arith.constant 0 : index
    %c0_40 = arith.constant 0 : index
    %225 = vector.load %arg5[%c0_39, %c0_40] : memref<96x128xf32, #tpu.memory_space<vmem>>, vector<32x128xf32>
    tpu.vector_store %arg5[%c0_39, %c0_40], %216 {strides = array<i32>} : memref<96x128xf32, #tpu.memory_space<vmem>>, vector<32x128xf32>,
    %c3_i32_41 = arith.constant 3 : i32
    %226 = arith.muli %arg0, %c3_i32_41 : i32
    %c1_i32_42 = arith.constant 1 : i32
    %227 = arith.addi %226, %c1_i32_42 : i32
    %228 = arith.index_cast %227 : i32 to index
    %c0_43 = arith.constant 0 : index
    %229 = memref.load %arg2[%228, %c0_43] : memref<6x32xf32, #tpu.memory_space<smem>>
    %230 = arith.index_cast %227 : i32 to index
    %c1_44 = arith.constant 1 : index
    %231 = memref.load %arg2[%230, %c1_44] : memref<6x32xf32, #tpu.memory_space<smem>>
    %232 = arith.index_cast %227 : i32 to index
    %c2_45 = arith.constant 2 : index
    %233 = memref.load %arg2[%232, %c2_45] : memref<6x32xf32, #tpu.memory_space<smem>>
    %234 = arith.index_cast %227 : i32 to index
    %c3_46 = arith.constant 3 : index
    %235 = memref.load %arg2[%234, %c3_46] : memref<6x32xf32, #tpu.memory_space<smem>>
    %236 = arith.index_cast %227 : i32 to index
    %c4_47 = arith.constant 4 : index
    %237 = memref.load %arg2[%236, %c4_47] : memref<6x32xf32, #tpu.memory_space<smem>>
    %238 = arith.index_cast %227 : i32 to index
    %c5_48 = arith.constant 5 : index
    %239 = memref.load %arg2[%238, %c5_48] : memref<6x32xf32, #tpu.memory_space<smem>>
    %240 = arith.index_cast %227 : i32 to index
    %c6_49 = arith.constant 6 : index
    %241 = memref.load %arg2[%240, %c6_49] : memref<6x32xf32, #tpu.memory_space<smem>>
    %242 = arith.index_cast %227 : i32 to index
    %c7_50 = arith.constant 7 : index
    %243 = memref.load %arg2[%242, %c7_50] : memref<6x32xf32, #tpu.memory_space<smem>>
    %244 = arith.index_cast %227 : i32 to index
    %c8_51 = arith.constant 8 : index
    %245 = memref.load %arg2[%244, %c8_51] : memref<6x32xf32, #tpu.memory_space<smem>>
    %246 = arith.index_cast %227 : i32 to index
    %c9_52 = arith.constant 9 : index
    %247 = memref.load %arg2[%246, %c9_52] : memref<6x32xf32, #tpu.memory_space<smem>>
    %248 = arith.index_cast %227 : i32 to index
    %c10_53 = arith.constant 10 : index
    %249 = memref.load %arg2[%248, %c10_53] : memref<6x32xf32, #tpu.memory_space<smem>>
    %250 = arith.index_cast %227 : i32 to index
    %c11_54 = arith.constant 11 : index
    %251 = memref.load %arg2[%250, %c11_54] : memref<6x32xf32, #tpu.memory_space<smem>>
    %252 = arith.index_cast %227 : i32 to index
    %c12_55 = arith.constant 12 : index
    %253 = memref.load %arg2[%252, %c12_55] : memref<6x32xf32, #tpu.memory_space<smem>>
    %254 = arith.index_cast %227 : i32 to index
    %c13_56 = arith.constant 13 : index
    %255 = memref.load %arg2[%254, %c13_56] : memref<6x32xf32, #tpu.memory_space<smem>>
    %256 = arith.index_cast %227 : i32 to index
    %c14_57 = arith.constant 14 : index
    %257 = memref.load %arg2[%256, %c14_57] : memref<6x32xf32, #tpu.memory_space<smem>>
    %258 = arith.index_cast %227 : i32 to index
    %c15_58 = arith.constant 15 : index
    %259 = memref.load %arg2[%258, %c15_58] : memref<6x32xf32, #tpu.memory_space<smem>>
    %260 = arith.index_cast %227 : i32 to index
    %c16_59 = arith.constant 16 : index
    %261 = memref.load %arg2[%260, %c16_59] : memref<6x32xf32, #tpu.memory_space<smem>>
    %262 = arith.index_cast %227 : i32 to index
    %c17_60 = arith.constant 17 : index
    %263 = memref.load %arg2[%262, %c17_60] : memref<6x32xf32, #tpu.memory_space<smem>>
    %264 = arith.index_cast %227 : i32 to index
    %c18_61 = arith.constant 18 : index
    %265 = memref.load %arg2[%264, %c18_61] : memref<6x32xf32, #tpu.memory_space<smem>>
    %266 = arith.index_cast %227 : i32 to index
    %c19_62 = arith.constant 19 : index
    %267 = memref.load %arg2[%266, %c19_62] : memref<6x32xf32, #tpu.memory_space<smem>>
    %268 = arith.index_cast %227 : i32 to index
    %c20_63 = arith.constant 20 : index
    %269 = memref.load %arg2[%268, %c20_63] : memref<6x32xf32, #tpu.memory_space<smem>>
    %270 = arith.index_cast %227 : i32 to index
    %c21_64 = arith.constant 21 : index
    %271 = memref.load %arg2[%270, %c21_64] : memref<6x32xf32, #tpu.memory_space<smem>>
    %272 = arith.index_cast %227 : i32 to index
    %c22_65 = arith.constant 22 : index
    %273 = memref.load %arg2[%272, %c22_65] : memref<6x32xf32, #tpu.memory_space<smem>>
    %274 = arith.index_cast %227 : i32 to index
    %c23_66 = arith.constant 23 : index
    %275 = memref.load %arg2[%274, %c23_66] : memref<6x32xf32, #tpu.memory_space<smem>>
    %276 = vector.broadcast %229 : f32 to vector<1x128xf32>
    %277 = arith.mulf %276, %0 : vector<1x128xf32>
    %278 = vector.broadcast %231 : f32 to vector<1x128xf32>
    %279 = arith.mulf %278, %1 : vector<1x128xf32>
    %280 = arith.addf %277, %279 : vector<1x128xf32>
    %281 = vector.broadcast %233 : f32 to vector<1x128xf32>
    %282 = arith.mulf %281, %2 : vector<1x128xf32>
    %283 = arith.addf %280, %282 : vector<1x128xf32>
    %284 = vector.broadcast %247 : f32 to vector<1x128xf32>
    %285 = arith.addf %283, %284 : vector<1x128xf32>
    %286 = vector.broadcast %235 : f32 to vector<1x128xf32>
    %287 = arith.mulf %286, %0 : vector<1x128xf32>
    %288 = vector.broadcast %237 : f32 to vector<1x128xf32>
    %289 = arith.mulf %288, %1 : vector<1x128xf32>
    %290 = arith.addf %287, %289 : vector<1x128xf32>
    %291 = vector.broadcast %239 : f32 to vector<1x128xf32>
    %292 = arith.mulf %291, %2 : vector<1x128xf32>
    %293 = arith.addf %290, %292 : vector<1x128xf32>
    %294 = vector.broadcast %249 : f32 to vector<1x128xf32>
    %295 = arith.addf %293, %294 : vector<1x128xf32>
    %296 = vector.broadcast %241 : f32 to vector<1x128xf32>
    %297 = arith.mulf %296, %0 : vector<1x128xf32>
    %298 = vector.broadcast %243 : f32 to vector<1x128xf32>
    %299 = arith.mulf %298, %1 : vector<1x128xf32>
    %300 = arith.addf %297, %299 : vector<1x128xf32>
    %301 = vector.broadcast %245 : f32 to vector<1x128xf32>
    %302 = arith.mulf %301, %2 : vector<1x128xf32>
    %303 = arith.addf %300, %302 : vector<1x128xf32>
    %304 = vector.broadcast %251 : f32 to vector<1x128xf32>
    %305 = arith.addf %303, %304 : vector<1x128xf32>
    %cst_67 = arith.constant 1.000000e+00 : f32
    %306 = vector.broadcast %cst_67 : f32 to vector<1x128xf32>
    %307 = arith.divf %306, %305 : vector<1x128xf32>
    %308 = arith.mulf %285, %307 : vector<1x128xf32>
    %309 = vector.broadcast %253 : f32 to vector<1x128xf32>
    %310 = arith.mulf %308, %309 : vector<1x128xf32>
    %311 = vector.broadcast %257 : f32 to vector<1x128xf32>
    %312 = arith.addf %310, %311 : vector<1x128xf32>
    %313 = arith.mulf %295, %307 : vector<1x128xf32>
    %314 = vector.broadcast %255 : f32 to vector<1x128xf32>
    %315 = arith.mulf %313, %314 : vector<1x128xf32>
    %316 = vector.broadcast %259 : f32 to vector<1x128xf32>
    %317 = arith.addf %315, %316 : vector<1x128xf32>
    %cst_68 = arith.constant 0.000000e+00 : f32
    %318 = vector.broadcast %cst_68 : f32 to vector<1x128xf32>
    %319 = arith.cmpf oge, %312, %318 : vector<1x128xf32>
    %cst_69 = arith.constant 0.000000e+00 : f32
    %320 = vector.broadcast %cst_69 : f32 to vector<1x128xf32>
    %321 = arith.cmpf oge, %317, %320 : vector<1x128xf32>
    %322 = arith.andi %319, %321 : vector<1x128xi1>
    %323 = vector.broadcast %261 : f32 to vector<1x128xf32>
    %324 = arith.cmpf olt, %312, %323 : vector<1x128xf32>
    %325 = arith.andi %322, %324 : vector<1x128xi1>
    %326 = vector.broadcast %263 : f32 to vector<1x128xf32>
    %327 = arith.cmpf olt, %317, %326 : vector<1x128xf32>
    %328 = arith.andi %325, %327 : vector<1x128xi1>
    %329 = arith.extui %328 : vector<1x128xi1> to vector<1x128xi32>
    %330 = arith.sitofp %329 : vector<1x128xi32> to vector<1x128xf32>
    %331 = arith.maximumf %261, %263 : f32
    %cst_70 = arith.constant -1.000000e+00 : f32
    %332 = vector.broadcast %cst_70 : f32 to vector<1x128xf32>
    %333 = arith.maximumf %332, %312 : vector<1x128xf32>
    %334 = vector.broadcast %331 : f32 to vector<1x128xf32>
    %335 = arith.minimumf %334, %333 : vector<1x128xf32>
    %cst_71 = arith.constant -1.000000e+00 : f32
    %336 = vector.broadcast %cst_71 : f32 to vector<1x128xf32>
    %337 = arith.maximumf %336, %317 : vector<1x128xf32>
    %338 = vector.broadcast %331 : f32 to vector<1x128xf32>
    %339 = arith.minimumf %338, %337 : vector<1x128xf32>
    %340 = vector.broadcast %265 : f32 to vector<1x128xf32>
    %341 = arith.mulf %340, %335 : vector<1x128xf32>
    %342 = vector.broadcast %267 : f32 to vector<1x128xf32>
    %343 = arith.mulf %342, %339 : vector<1x128xf32>
    %344 = arith.addf %341, %343 : vector<1x128xf32>
    %345 = vector.broadcast %269 : f32 to vector<1x128xf32>
    %346 = arith.addf %344, %345 : vector<1x128xf32>
    %347 = vector.broadcast %271 : f32 to vector<1x128xf32>
    %348 = arith.mulf %347, %335 : vector<1x128xf32>
    %349 = vector.broadcast %273 : f32 to vector<1x128xf32>
    %350 = arith.mulf %349, %339 : vector<1x128xf32>
    %351 = arith.addf %348, %350 : vector<1x128xf32>
    %352 = vector.broadcast %275 : f32 to vector<1x128xf32>
    %353 = arith.addf %351, %352 : vector<1x128xf32>
    %cst_72 = arith.constant 0.13333334 : f32
    %354 = vector.broadcast %cst_72 : f32 to vector<1x128xf32>
    %355 = arith.mulf %346, %354 : vector<1x128xf32>
    %cst_73 = arith.constant 1.000000e+00 : f32
    %356 = vector.broadcast %cst_73 : f32 to vector<1x128xf32>
    %357 = arith.subf %355, %356 : vector<1x128xf32>
    %cst_74 = arith.constant -1.100000e+00 : f32
    %cst_75 = arith.constant 1.100000e+00 : f32
    %358 = vector.broadcast %cst_74 : f32 to vector<1x128xf32>
    %359 = arith.maximumf %358, %357 : vector<1x128xf32>
    %360 = vector.broadcast %cst_75 : f32 to vector<1x128xf32>
    %361 = arith.minimumf %360, %359 : vector<1x128xf32>
    %cst_76 = arith.constant 0.13333334 : f32
    %362 = vector.broadcast %cst_76 : f32 to vector<1x128xf32>
    %363 = arith.mulf %353, %362 : vector<1x128xf32>
    %cst_77 = arith.constant 1.000000e+00 : f32
    %364 = vector.broadcast %cst_77 : f32 to vector<1x128xf32>
    %365 = arith.subf %363, %364 : vector<1x128xf32>
    %cst_78 = arith.constant -1.100000e+00 : f32
    %cst_79 = arith.constant 1.100000e+00 : f32
    %366 = vector.broadcast %cst_78 : f32 to vector<1x128xf32>
    %367 = arith.maximumf %366, %365 : vector<1x128xf32>
    %368 = vector.broadcast %cst_79 : f32 to vector<1x128xf32>
    %369 = arith.minimumf %368, %367 : vector<1x128xf32>
    %cst_80 = arith.constant 1.000000e+00 : f32
    %370 = vector.broadcast %cst_80 : f32 to vector<1x128xf32>
    %371 = arith.addf %361, %370 : vector<1x128xf32>
    %cst_81 = arith.constant 7.500000e+00 : f32
    %372 = vector.broadcast %cst_81 : f32 to vector<1x128xf32>
    %373 = arith.mulf %371, %372 : vector<1x128xf32>
    %cst_82 = arith.constant 1.000000e+00 : f32
    %374 = vector.broadcast %cst_82 : f32 to vector<1x128xf32>
    %375 = arith.addf %369, %374 : vector<1x128xf32>
    %cst_83 = arith.constant 7.500000e+00 : f32
    %376 = vector.broadcast %cst_83 : f32 to vector<1x128xf32>
    %377 = arith.mulf %375, %376 : vector<1x128xf32>
    %378 = arith.cmpf one, %373, %373 : vector<1x128xf32>
    %cst_84 = arith.constant -2.000000e+00 : f32
    %379 = vector.broadcast %cst_84 : f32 to vector<1x128xf32>
    %380 = arith.select %378, %379, %373 : vector<1x128xi1>, vector<1x128xf32>
    %381 = arith.cmpf one, %377, %377 : vector<1x128xf32>
    %cst_85 = arith.constant -2.000000e+00 : f32
    %382 = vector.broadcast %cst_85 : f32 to vector<1x128xf32>
    %383 = arith.select %381, %382, %377 : vector<1x128xi1>, vector<1x128xf32>
    %384 = math.floor %380 : vector<1x128xf32>
    %385 = math.floor %383 : vector<1x128xf32>
    %386 = arith.subf %380, %384 : vector<1x128xf32>
    %387 = arith.subf %383, %385 : vector<1x128xf32>
    %388 = arith.fptosi %384 : vector<1x128xf32> to vector<1x128xi32>
    %c1_i32_86 = arith.constant 1 : i32
    %389 = vector.broadcast %c1_i32_86 : i32 to vector<1x128xi32>
    %390 = arith.addi %388, %389 : vector<1x128xi32>
    %391 = arith.fptosi %385 : vector<1x128xf32> to vector<1x128xi32>
    %c1_i32_87 = arith.constant 1 : i32
    %392 = vector.broadcast %c1_i32_87 : i32 to vector<1x128xi32>
    %393 = arith.addi %391, %392 : vector<1x128xi32>
    %394 = vector.broadcast %388 : vector<1x128xi32> to vector<16x128xi32>
    %395 = arith.cmpi eq, %3, %394 : vector<16x128xi32>
    %cst_88 = arith.constant 1.000000e+00 : f32
    %396 = vector.broadcast %cst_88 : f32 to vector<1x128xf32>
    %397 = arith.subf %396, %386 : vector<1x128xf32>
    %cst_89 = arith.constant 0.000000e+00 : f32
    %398 = vector.shape_cast %397 : vector<1x128xf32> to vector<1x128xf32>
    %399 = vector.broadcast %398 : vector<1x128xf32> to vector<16x128xf32>
    %400 = vector.broadcast %cst_89 : f32 to vector<16x128xf32>
    %401 = arith.select %395, %399, %400 : vector<16x128xi1>, vector<16x128xf32>
    %402 = vector.broadcast %390 : vector<1x128xi32> to vector<16x128xi32>
    %403 = arith.cmpi eq, %3, %402 : vector<16x128xi32>
    %cst_90 = arith.constant 0.000000e+00 : f32
    %404 = vector.shape_cast %386 : vector<1x128xf32> to vector<1x128xf32>
    %405 = vector.broadcast %404 : vector<1x128xf32> to vector<16x128xf32>
    %406 = vector.broadcast %cst_90 : f32 to vector<16x128xf32>
    %407 = arith.select %403, %405, %406 : vector<16x128xi1>, vector<16x128xf32>
    %408 = arith.addf %401, %407 : vector<16x128xf32>
    %409 = vector.broadcast %391 : vector<1x128xi32> to vector<16x128xi32>
    %410 = arith.cmpi eq, %4, %409 : vector<16x128xi32>
    %cst_91 = arith.constant 1.000000e+00 : f32
    %411 = vector.broadcast %cst_91 : f32 to vector<1x128xf32>
    %412 = arith.subf %411, %387 : vector<1x128xf32>
    %cst_92 = arith.constant 0.000000e+00 : f32
    %413 = vector.shape_cast %412 : vector<1x128xf32> to vector<1x128xf32>
    %414 = vector.broadcast %413 : vector<1x128xf32> to vector<16x128xf32>
    %415 = vector.broadcast %cst_92 : f32 to vector<16x128xf32>
    %416 = arith.select %410, %414, %415 : vector<16x128xi1>, vector<16x128xf32>
    %417 = vector.broadcast %393 : vector<1x128xi32> to vector<16x128xi32>
    %418 = arith.cmpi eq, %4, %417 : vector<16x128xi32>
    %cst_93 = arith.constant 0.000000e+00 : f32
    %419 = vector.shape_cast %387 : vector<1x128xf32> to vector<1x128xf32>
    %420 = vector.broadcast %419 : vector<1x128xf32> to vector<16x128xf32>
    %421 = vector.broadcast %cst_93 : f32 to vector<16x128xf32>
    %422 = arith.select %418, %420, %421 : vector<16x128xi1>, vector<16x128xf32>
    %423 = arith.addf %416, %422 : vector<16x128xf32>
    %424 = vector.shape_cast %423 : vector<16x128xf32> to vector<16x1x128xf32>
    %425 = vector.shape_cast %408 : vector<16x128xf32> to vector<1x16x128xf32>
    %426 = vector.broadcast %424 : vector<16x1x128xf32> to vector<16x16x128xf32>
    %427 = vector.broadcast %425 : vector<1x16x128xf32> to vector<16x16x128xf32>
    %428 = arith.mulf %426, %427 : vector<16x16x128xf32>
    %429 = vector.shape_cast %428 : vector<16x16x128xf32> to vector<256x128xf32>
    %430 = arith.truncf %429 : vector<256x128xf32> to vector<256x128xbf16>
    %c32 = arith.constant 32 : index
    %c0_94 = arith.constant 0 : index
    %431 = vector.load %arg4[%c32, %c0_94] : memref<96x256xf32, #tpu.memory_space<vmem>>, vector<32x256xf32>
    %432 = arith.truncf %431 : vector<32x256xf32> to vector<32x256xbf16>
    %cst_95 = arith.constant dense<0.000000e+00> : vector<32x128xf32>
    %433 = tpu.matmul %432, %430, %cst_95 {dimension_numbers = #tpu.dot_dimension_numbers<[1], [0], [0], [1], [0, 0, 1, 1], [], []>} : vector<32x256xbf16>, vector<256x128xbf16>, vector<32x128xf32> -> vector<32x128xf32>
    %434 = vector.broadcast %330 : vector<1x128xf32> to vector<32x128xf32>
    %435 = arith.mulf %433, %434 : vector<32x128xf32>
    %436 = arith.cmpf one, %435, %435 : vector<32x128xf32>
    %cst_96 = arith.constant 1.000000e+00 : f32
    %cst_97 = arith.constant 0.000000e+00 : f32
    %437 = vector.broadcast %cst_96 : f32 to vector<32x128xf32>
    %438 = vector.broadcast %cst_97 : f32 to vector<32x128xf32>
    %439 = arith.select %436, %437, %438 : vector<32x128xi1>, vector<32x128xf32>
    %cst_98 = arith.constant dense<0xFF800000> : vector<128xf32>
    %440 = vector.multi_reduction <maximumf>, %439, %cst_98 [0] : vector<32x128xf32> to vector<128xf32>
    %441 = vector.shape_cast %440 : vector<128xf32> to vector<1x128xf32>
    %442 = arith.maximumf %223, %441 : vector<1x128xf32>
    %443 = arith.maximumf %224, %330 : vector<1x128xf32>
    %c32_99 = arith.constant 32 : index
    %c0_100 = arith.constant 0 : index
    %444 = vector.load %arg5[%c32_99, %c0_100] : memref<96x128xf32, #tpu.memory_space<vmem>>, vector<32x128xf32>
    tpu.vector_store %arg5[%c32_99, %c0_100], %435 {strides = array<i32>} : memref<96x128xf32, #tpu.memory_space<vmem>>, vector<32x128xf32>,
    %c3_i32_101 = arith.constant 3 : i32
    %445 = arith.muli %arg0, %c3_i32_101 : i32
    %c2_i32 = arith.constant 2 : i32
    %446 = arith.addi %445, %c2_i32 : i32
    %447 = arith.index_cast %446 : i32 to index
    %c0_102 = arith.constant 0 : index
    %448 = memref.load %arg2[%447, %c0_102] : memref<6x32xf32, #tpu.memory_space<smem>>
    %449 = arith.index_cast %446 : i32 to index
    %c1_103 = arith.constant 1 : index
    %450 = memref.load %arg2[%449, %c1_103] : memref<6x32xf32, #tpu.memory_space<smem>>
    %451 = arith.index_cast %446 : i32 to index
    %c2_104 = arith.constant 2 : index
    %452 = memref.load %arg2[%451, %c2_104] : memref<6x32xf32, #tpu.memory_space<smem>>
    %453 = arith.index_cast %446 : i32 to index
    %c3_105 = arith.constant 3 : index
    %454 = memref.load %arg2[%453, %c3_105] : memref<6x32xf32, #tpu.memory_space<smem>>
    %455 = arith.index_cast %446 : i32 to index
    %c4_106 = arith.constant 4 : index
    %456 = memref.load %arg2[%455, %c4_106] : memref<6x32xf32, #tpu.memory_space<smem>>
    %457 = arith.index_cast %446 : i32 to index
    %c5_107 = arith.constant 5 : index
    %458 = memref.load %arg2[%457, %c5_107] : memref<6x32xf32, #tpu.memory_space<smem>>
    %459 = arith.index_cast %446 : i32 to index
    %c6_108 = arith.constant 6 : index
    %460 = memref.load %arg2[%459, %c6_108] : memref<6x32xf32, #tpu.memory_space<smem>>
    %461 = arith.index_cast %446 : i32 to index
    %c7_109 = arith.constant 7 : index
    %462 = memref.load %arg2[%461, %c7_109] : memref<6x32xf32, #tpu.memory_space<smem>>
    %463 = arith.index_cast %446 : i32 to index
    %c8_110 = arith.constant 8 : index
    %464 = memref.load %arg2[%463, %c8_110] : memref<6x32xf32, #tpu.memory_space<smem>>
    %465 = arith.index_cast %446 : i32 to index
    %c9_111 = arith.constant 9 : index
    %466 = memref.load %arg2[%465, %c9_111] : memref<6x32xf32, #tpu.memory_space<smem>>
    %467 = arith.index_cast %446 : i32 to index
    %c10_112 = arith.constant 10 : index
    %468 = memref.load %arg2[%467, %c10_112] : memref<6x32xf32, #tpu.memory_space<smem>>
    %469 = arith.index_cast %446 : i32 to index
    %c11_113 = arith.constant 11 : index
    %470 = memref.load %arg2[%469, %c11_113] : memref<6x32xf32, #tpu.memory_space<smem>>
    %471 = arith.index_cast %446 : i32 to index
    %c12_114 = arith.constant 12 : index
    %472 = memref.load %arg2[%471, %c12_114] : memref<6x32xf32, #tpu.memory_space<smem>>
    %473 = arith.index_cast %446 : i32 to index
    %c13_115 = arith.constant 13 : index
    %474 = memref.load %arg2[%473, %c13_115] : memref<6x32xf32, #tpu.memory_space<smem>>
    %475 = arith.index_cast %446 : i32 to index
    %c14_116 = arith.constant 14 : index
    %476 = memref.load %arg2[%475, %c14_116] : memref<6x32xf32, #tpu.memory_space<smem>>
    %477 = arith.index_cast %446 : i32 to index
    %c15_117 = arith.constant 15 : index
    %478 = memref.load %arg2[%477, %c15_117] : memref<6x32xf32, #tpu.memory_space<smem>>
    %479 = arith.index_cast %446 : i32 to index
    %c16_118 = arith.constant 16 : index
    %480 = memref.load %arg2[%479, %c16_118] : memref<6x32xf32, #tpu.memory_space<smem>>
    %481 = arith.index_cast %446 : i32 to index
    %c17_119 = arith.constant 17 : index
    %482 = memref.load %arg2[%481, %c17_119] : memref<6x32xf32, #tpu.memory_space<smem>>
    %483 = arith.index_cast %446 : i32 to index
    %c18_120 = arith.constant 18 : index
    %484 = memref.load %arg2[%483, %c18_120] : memref<6x32xf32, #tpu.memory_space<smem>>
    %485 = arith.index_cast %446 : i32 to index
    %c19_121 = arith.constant 19 : index
    %486 = memref.load %arg2[%485, %c19_121] : memref<6x32xf32, #tpu.memory_space<smem>>
    %487 = arith.index_cast %446 : i32 to index
    %c20_122 = arith.constant 20 : index
    %488 = memref.load %arg2[%487, %c20_122] : memref<6x32xf32, #tpu.memory_space<smem>>
    %489 = arith.index_cast %446 : i32 to index
    %c21_123 = arith.constant 21 : index
    %490 = memref.load %arg2[%489, %c21_123] : memref<6x32xf32, #tpu.memory_space<smem>>
    %491 = arith.index_cast %446 : i32 to index
    %c22_124 = arith.constant 22 : index
    %492 = memref.load %arg2[%491, %c22_124] : memref<6x32xf32, #tpu.memory_space<smem>>
    %493 = arith.index_cast %446 : i32 to index
    %c23_125 = arith.constant 23 : index
    %494 = memref.load %arg2[%493, %c23_125] : memref<6x32xf32, #tpu.memory_space<smem>>
    %495 = vector.broadcast %448 : f32 to vector<1x128xf32>
    %496 = arith.mulf %495, %0 : vector<1x128xf32>
    %497 = vector.broadcast %450 : f32 to vector<1x128xf32>
    %498 = arith.mulf %497, %1 : vector<1x128xf32>
    %499 = arith.addf %496, %498 : vector<1x128xf32>
    %500 = vector.broadcast %452 : f32 to vector<1x128xf32>
    %501 = arith.mulf %500, %2 : vector<1x128xf32>
    %502 = arith.addf %499, %501 : vector<1x128xf32>
    %503 = vector.broadcast %466 : f32 to vector<1x128xf32>
    %504 = arith.addf %502, %503 : vector<1x128xf32>
    %505 = vector.broadcast %454 : f32 to vector<1x128xf32>
    %506 = arith.mulf %505, %0 : vector<1x128xf32>
    %507 = vector.broadcast %456 : f32 to vector<1x128xf32>
    %508 = arith.mulf %507, %1 : vector<1x128xf32>
    %509 = arith.addf %506, %508 : vector<1x128xf32>
    %510 = vector.broadcast %458 : f32 to vector<1x128xf32>
    %511 = arith.mulf %510, %2 : vector<1x128xf32>
    %512 = arith.addf %509, %511 : vector<1x128xf32>
    %513 = vector.broadcast %468 : f32 to vector<1x128xf32>
    %514 = arith.addf %512, %513 : vector<1x128xf32>
    %515 = vector.broadcast %460 : f32 to vector<1x128xf32>
    %516 = arith.mulf %515, %0 : vector<1x128xf32>
    %517 = vector.broadcast %462 : f32 to vector<1x128xf32>
    %518 = arith.mulf %517, %1 : vector<1x128xf32>
    %519 = arith.addf %516, %518 : vector<1x128xf32>
    %520 = vector.broadcast %464 : f32 to vector<1x128xf32>
    %521 = arith.mulf %520, %2 : vector<1x128xf32>
    %522 = arith.addf %519, %521 : vector<1x128xf32>
    %523 = vector.broadcast %470 : f32 to vector<1x128xf32>
    %524 = arith.addf %522, %523 : vector<1x128xf32>
    %cst_126 = arith.constant 1.000000e+00 : f32
    %525 = vector.broadcast %cst_126 : f32 to vector<1x128xf32>
    %526 = arith.divf %525, %524 : vector<1x128xf32>
    %527 = arith.mulf %504, %526 : vector<1x128xf32>
    %528 = vector.broadcast %472 : f32 to vector<1x128xf32>
    %529 = arith.mulf %527, %528 : vector<1x128xf32>
    %530 = vector.broadcast %476 : f32 to vector<1x128xf32>
    %531 = arith.addf %529, %530 : vector<1x128xf32>
    %532 = arith.mulf %514, %526 : vector<1x128xf32>
    %533 = vector.broadcast %474 : f32 to vector<1x128xf32>
    %534 = arith.mulf %532, %533 : vector<1x128xf32>
    %535 = vector.broadcast %478 : f32 to vector<1x128xf32>
    %536 = arith.addf %534, %535 : vector<1x128xf32>
    %cst_127 = arith.constant 0.000000e+00 : f32
    %537 = vector.broadcast %cst_127 : f32 to vector<1x128xf32>
    %538 = arith.cmpf oge, %531, %537 : vector<1x128xf32>
    %cst_128 = arith.constant 0.000000e+00 : f32
    %539 = vector.broadcast %cst_128 : f32 to vector<1x128xf32>
    %540 = arith.cmpf oge, %536, %539 : vector<1x128xf32>
    %541 = arith.andi %538, %540 : vector<1x128xi1>
    %542 = vector.broadcast %480 : f32 to vector<1x128xf32>
    %543 = arith.cmpf olt, %531, %542 : vector<1x128xf32>
    %544 = arith.andi %541, %543 : vector<1x128xi1>
    %545 = vector.broadcast %482 : f32 to vector<1x128xf32>
    %546 = arith.cmpf olt, %536, %545 : vector<1x128xf32>
    %547 = arith.andi %544, %546 : vector<1x128xi1>
    %548 = arith.extui %547 : vector<1x128xi1> to vector<1x128xi32>
    %549 = arith.sitofp %548 : vector<1x128xi32> to vector<1x128xf32>
    %550 = arith.maximumf %480, %482 : f32
    %cst_129 = arith.constant -1.000000e+00 : f32
    %551 = vector.broadcast %cst_129 : f32 to vector<1x128xf32>
    %552 = arith.maximumf %551, %531 : vector<1x128xf32>
    %553 = vector.broadcast %550 : f32 to vector<1x128xf32>
    %554 = arith.minimumf %553, %552 : vector<1x128xf32>
    %cst_130 = arith.constant -1.000000e+00 : f32
    %555 = vector.broadcast %cst_130 : f32 to vector<1x128xf32>
    %556 = arith.maximumf %555, %536 : vector<1x128xf32>
    %557 = vector.broadcast %550 : f32 to vector<1x128xf32>
    %558 = arith.minimumf %557, %556 : vector<1x128xf32>
    %559 = vector.broadcast %484 : f32 to vector<1x128xf32>
    %560 = arith.mulf %559, %554 : vector<1x128xf32>
    %561 = vector.broadcast %486 : f32 to vector<1x128xf32>
    %562 = arith.mulf %561, %558 : vector<1x128xf32>
    %563 = arith.addf %560, %562 : vector<1x128xf32>
    %564 = vector.broadcast %488 : f32 to vector<1x128xf32>
    %565 = arith.addf %563, %564 : vector<1x128xf32>
    %566 = vector.broadcast %490 : f32 to vector<1x128xf32>
    %567 = arith.mulf %566, %554 : vector<1x128xf32>
    %568 = vector.broadcast %492 : f32 to vector<1x128xf32>
    %569 = arith.mulf %568, %558 : vector<1x128xf32>
    %570 = arith.addf %567, %569 : vector<1x128xf32>
    %571 = vector.broadcast %494 : f32 to vector<1x128xf32>
    %572 = arith.addf %570, %571 : vector<1x128xf32>
    %cst_131 = arith.constant 0.13333334 : f32
    %573 = vector.broadcast %cst_131 : f32 to vector<1x128xf32>
    %574 = arith.mulf %565, %573 : vector<1x128xf32>
    %cst_132 = arith.constant 1.000000e+00 : f32
    %575 = vector.broadcast %cst_132 : f32 to vector<1x128xf32>
    %576 = arith.subf %574, %575 : vector<1x128xf32>
    %cst_133 = arith.constant -1.100000e+00 : f32
    %cst_134 = arith.constant 1.100000e+00 : f32
    %577 = vector.broadcast %cst_133 : f32 to vector<1x128xf32>
    %578 = arith.maximumf %577, %576 : vector<1x128xf32>
    %579 = vector.broadcast %cst_134 : f32 to vector<1x128xf32>
    %580 = arith.minimumf %579, %578 : vector<1x128xf32>
    %cst_135 = arith.constant 0.13333334 : f32
    %581 = vector.broadcast %cst_135 : f32 to vector<1x128xf32>
    %582 = arith.mulf %572, %581 : vector<1x128xf32>
    %cst_136 = arith.constant 1.000000e+00 : f32
    %583 = vector.broadcast %cst_136 : f32 to vector<1x128xf32>
    %584 = arith.subf %582, %583 : vector<1x128xf32>
    %cst_137 = arith.constant -1.100000e+00 : f32
    %cst_138 = arith.constant 1.100000e+00 : f32
    %585 = vector.broadcast %cst_137 : f32 to vector<1x128xf32>
    %586 = arith.maximumf %585, %584 : vector<1x128xf32>
    %587 = vector.broadcast %cst_138 : f32 to vector<1x128xf32>
    %588 = arith.minimumf %587, %586 : vector<1x128xf32>
    %cst_139 = arith.constant 1.000000e+00 : f32
    %589 = vector.broadcast %cst_139 : f32 to vector<1x128xf32>
    %590 = arith.addf %580, %589 : vector<1x128xf32>
    %cst_140 = arith.constant 7.500000e+00 : f32
    %591 = vector.broadcast %cst_140 : f32 to vector<1x128xf32>
    %592 = arith.mulf %590, %591 : vector<1x128xf32>
    %cst_141 = arith.constant 1.000000e+00 : f32
    %593 = vector.broadcast %cst_141 : f32 to vector<1x128xf32>
    %594 = arith.addf %588, %593 : vector<1x128xf32>
    %cst_142 = arith.constant 7.500000e+00 : f32
    %595 = vector.broadcast %cst_142 : f32 to vector<1x128xf32>
    %596 = arith.mulf %594, %595 : vector<1x128xf32>
    %597 = arith.cmpf one, %592, %592 : vector<1x128xf32>
    %cst_143 = arith.constant -2.000000e+00 : f32
    %598 = vector.broadcast %cst_143 : f32 to vector<1x128xf32>
    %599 = arith.select %597, %598, %592 : vector<1x128xi1>, vector<1x128xf32>
    %600 = arith.cmpf one, %596, %596 : vector<1x128xf32>
    %cst_144 = arith.constant -2.000000e+00 : f32
    %601 = vector.broadcast %cst_144 : f32 to vector<1x128xf32>
    %602 = arith.select %600, %601, %596 : vector<1x128xi1>, vector<1x128xf32>
    %603 = math.floor %599 : vector<1x128xf32>
    %604 = math.floor %602 : vector<1x128xf32>
    %605 = arith.subf %599, %603 : vector<1x128xf32>
    %606 = arith.subf %602, %604 : vector<1x128xf32>
    %607 = arith.fptosi %603 : vector<1x128xf32> to vector<1x128xi32>
    %c1_i32_145 = arith.constant 1 : i32
    %608 = vector.broadcast %c1_i32_145 : i32 to vector<1x128xi32>
    %609 = arith.addi %607, %608 : vector<1x128xi32>
    %610 = arith.fptosi %604 : vector<1x128xf32> to vector<1x128xi32>
    %c1_i32_146 = arith.constant 1 : i32
    %611 = vector.broadcast %c1_i32_146 : i32 to vector<1x128xi32>
    %612 = arith.addi %610, %611 : vector<1x128xi32>
    %613 = vector.broadcast %607 : vector<1x128xi32> to vector<16x128xi32>
    %614 = arith.cmpi eq, %3, %613 : vector<16x128xi32>
    %cst_147 = arith.constant 1.000000e+00 : f32
    %615 = vector.broadcast %cst_147 : f32 to vector<1x128xf32>
    %616 = arith.subf %615, %605 : vector<1x128xf32>
    %cst_148 = arith.constant 0.000000e+00 : f32
    %617 = vector.shape_cast %616 : vector<1x128xf32> to vector<1x128xf32>
    %618 = vector.broadcast %617 : vector<1x128xf32> to vector<16x128xf32>
    %619 = vector.broadcast %cst_148 : f32 to vector<16x128xf32>
    %620 = arith.select %614, %618, %619 : vector<16x128xi1>, vector<16x128xf32>
    %621 = vector.broadcast %609 : vector<1x128xi32> to vector<16x128xi32>
    %622 = arith.cmpi eq, %3, %621 : vector<16x128xi32>
    %cst_149 = arith.constant 0.000000e+00 : f32
    %623 = vector.shape_cast %605 : vector<1x128xf32> to vector<1x128xf32>
    %624 = vector.broadcast %623 : vector<1x128xf32> to vector<16x128xf32>
    %625 = vector.broadcast %cst_149 : f32 to vector<16x128xf32>
    %626 = arith.select %622, %624, %625 : vector<16x128xi1>, vector<16x128xf32>
    %627 = arith.addf %620, %626 : vector<16x128xf32>
    %628 = vector.broadcast %610 : vector<1x128xi32> to vector<16x128xi32>
    %629 = arith.cmpi eq, %4, %628 : vector<16x128xi32>
    %cst_150 = arith.constant 1.000000e+00 : f32
    %630 = vector.broadcast %cst_150 : f32 to vector<1x128xf32>
    %631 = arith.subf %630, %606 : vector<1x128xf32>
    %cst_151 = arith.constant 0.000000e+00 : f32
    %632 = vector.shape_cast %631 : vector<1x128xf32> to vector<1x128xf32>
    %633 = vector.broadcast %632 : vector<1x128xf32> to vector<16x128xf32>
    %634 = vector.broadcast %cst_151 : f32 to vector<16x128xf32>
    %635 = arith.select %629, %633, %634 : vector<16x128xi1>, vector<16x128xf32>
    %636 = vector.broadcast %612 : vector<1x128xi32> to vector<16x128xi32>
    %637 = arith.cmpi eq, %4, %636 : vector<16x128xi32>
    %cst_152 = arith.constant 0.000000e+00 : f32
    %638 = vector.shape_cast %606 : vector<1x128xf32> to vector<1x128xf32>
    %639 = vector.broadcast %638 : vector<1x128xf32> to vector<16x128xf32>
    %640 = vector.broadcast %cst_152 : f32 to vector<16x128xf32>
    %641 = arith.select %637, %639, %640 : vector<16x128xi1>, vector<16x128xf32>
    %642 = arith.addf %635, %641 : vector<16x128xf32>
    %643 = vector.shape_cast %642 : vector<16x128xf32> to vector<16x1x128xf32>
    %644 = vector.shape_cast %627 : vector<16x128xf32> to vector<1x16x128xf32>
    %645 = vector.broadcast %643 : vector<16x1x128xf32> to vector<16x16x128xf32>
    %646 = vector.broadcast %644 : vector<1x16x128xf32> to vector<16x16x128xf32>
    %647 = arith.mulf %645, %646 : vector<16x16x128xf32>
    %648 = vector.shape_cast %647 : vector<16x16x128xf32> to vector<256x128xf32>
    %649 = arith.truncf %648 : vector<256x128xf32> to vector<256x128xbf16>
    %c64 = arith.constant 64 : index
    %c0_153 = arith.constant 0 : index
    %650 = vector.load %arg4[%c64, %c0_153] : memref<96x256xf32, #tpu.memory_space<vmem>>, vector<32x256xf32>
    %651 = arith.truncf %650 : vector<32x256xf32> to vector<32x256xbf16>
    %cst_154 = arith.constant dense<0.000000e+00> : vector<32x128xf32>
    %652 = tpu.matmul %651, %649, %cst_154 {dimension_numbers = #tpu.dot_dimension_numbers<[1], [0], [0], [1], [0, 0, 1, 1], [], []>} : vector<32x256xbf16>, vector<256x128xbf16>, vector<32x128xf32> -> vector<32x128xf32>
    %653 = vector.broadcast %549 : vector<1x128xf32> to vector<32x128xf32>
    %654 = arith.mulf %652, %653 : vector<32x128xf32>
    %655 = arith.cmpf one, %654, %654 : vector<32x128xf32>
    %cst_155 = arith.constant 1.000000e+00 : f32
    %cst_156 = arith.constant 0.000000e+00 : f32
    %656 = vector.broadcast %cst_155 : f32 to vector<32x128xf32>
    %657 = vector.broadcast %cst_156 : f32 to vector<32x128xf32>
    %658 = arith.select %655, %656, %657 : vector<32x128xi1>, vector<32x128xf32>
    %cst_157 = arith.constant dense<0xFF800000> : vector<128xf32>
    %659 = vector.multi_reduction <maximumf>, %658, %cst_157 [0] : vector<32x128xf32> to vector<128xf32>
    %660 = vector.shape_cast %659 : vector<128xf32> to vector<1x128xf32>
    %661 = arith.maximumf %442, %660 : vector<1x128xf32>
    %662 = arith.maximumf %443, %549 : vector<1x128xf32>
    %c64_158 = arith.constant 64 : index
    %c0_159 = arith.constant 0 : index
    %663 = vector.load %arg5[%c64_158, %c0_159] : memref<96x128xf32, #tpu.memory_space<vmem>>, vector<32x128xf32>
    tpu.vector_store %arg5[%c64_158, %c0_159], %654 {strides = array<i32>} : memref<96x128xf32, #tpu.memory_space<vmem>>, vector<32x128xf32>,
    %cst_160 = arith.constant 0.000000e+00 : f32
    %664 = vector.broadcast %cst_160 : f32 to vector<1x128xf32>
    %665 = arith.cmpf ogt, %661, %664 : vector<1x128xf32>
    %c0_161 = arith.constant 0 : index
    %c0_162 = arith.constant 0 : index
    %666 = vector.load %arg5[%c0_161, %c0_162] : memref<96x128xf32, #tpu.memory_space<vmem>>, vector<32x128xf32>
    %cst_163 = arith.constant 0.000000e+00 : f32
    %667 = vector.shape_cast %665 : vector<1x128xi1> to vector<1x128xi1>
    %668 = vector.broadcast %667 : vector<1x128xi1> to vector<32x128xi1>
    %669 = vector.broadcast %cst_163 : f32 to vector<32x128xf32>
    %670 = arith.select %668, %669, %666 : vector<32x128xi1>, vector<32x128xf32>
    %c0_164 = arith.constant 0 : index
    %c0_165 = arith.constant 0 : index
    %671 = vector.load %arg5[%c0_164, %c0_165] : memref<96x128xf32, #tpu.memory_space<vmem>>, vector<32x128xf32>
    tpu.vector_store %arg5[%c0_164, %c0_165], %670 {strides = array<i32>} : memref<96x128xf32, #tpu.memory_space<vmem>>, vector<32x128xf32>,
    %c32_166 = arith.constant 32 : index
    %c0_167 = arith.constant 0 : index
    %672 = vector.load %arg5[%c32_166, %c0_167] : memref<96x128xf32, #tpu.memory_space<vmem>>, vector<32x128xf32>
    %cst_168 = arith.constant 0.000000e+00 : f32
    %673 = vector.shape_cast %665 : vector<1x128xi1> to vector<1x128xi1>
    %674 = vector.broadcast %673 : vector<1x128xi1> to vector<32x128xi1>
    %675 = vector.broadcast %cst_168 : f32 to vector<32x128xf32>
    %676 = arith.select %674, %675, %672 : vector<32x128xi1>, vector<32x128xf32>
    %c32_169 = arith.constant 32 : index
    %c0_170 = arith.constant 0 : index
    %677 = vector.load %arg5[%c32_169, %c0_170] : memref<96x128xf32, #tpu.memory_space<vmem>>, vector<32x128xf32>
    tpu.vector_store %arg5[%c32_169, %c0_170], %676 {strides = array<i32>} : memref<96x128xf32, #tpu.memory_space<vmem>>, vector<32x128xf32>,
    %c64_171 = arith.constant 64 : index
    %c0_172 = arith.constant 0 : index
    %678 = vector.load %arg5[%c64_171, %c0_172] : memref<96x128xf32, #tpu.memory_space<vmem>>, vector<32x128xf32>
    %cst_173 = arith.constant 0.000000e+00 : f32
    %679 = vector.shape_cast %665 : vector<1x128xi1> to vector<1x128xi1>
    %680 = vector.broadcast %679 : vector<1x128xi1> to vector<32x128xi1>
    %681 = vector.broadcast %cst_173 : f32 to vector<32x128xf32>
    %682 = arith.select %680, %681, %678 : vector<32x128xi1>, vector<32x128xf32>
    %c64_174 = arith.constant 64 : index
    %c0_175 = arith.constant 0 : index
    %683 = vector.load %arg5[%c64_174, %c0_175] : memref<96x128xf32, #tpu.memory_space<vmem>>, vector<32x128xf32>
    tpu.vector_store %arg5[%c64_174, %c0_175], %682 {strides = array<i32>} : memref<96x128xf32, #tpu.memory_space<vmem>>, vector<32x128xf32>,
    %cst_176 = arith.constant 0.000000e+00 : f32
    %684 = vector.broadcast %cst_176 : f32 to vector<1x128xf32>
    %685 = arith.select %665, %684, %662 : vector<1x128xi1>, vector<1x128xf32>
    %686 = vector.shape_cast %685 : vector<1x128xf32> to vector<1x128xf32>
    %687 = vector.broadcast %686 : vector<1x128xf32> to vector<8x128xf32>
    %c0_177 = arith.constant 0 : index
    %c0_178 = arith.constant 0 : index
    %688 = vector.load %arg6[%c0_177, %c0_178] : memref<8x128xf32, #tpu.memory_space<vmem>>, vector<8x128xf32>
    tpu.vector_store %arg6[%c0_177, %c0_178], %687 {strides = array<i32>} : memref<8x128xf32, #tpu.memory_space<vmem>>, vector<8x128xf32>,
    return
  }
  func.func @transform_0(%arg0: i32, %arg1: i32) -> (i32, i32) {
    %c0_i32 = arith.constant 0 : i32
    %c0_i32_0 = arith.constant 0 : i32
    %c0_i32_1 = arith.constant 0 : i32
    return %c0_i32, %c0_i32_0 : i32, i32
  }
  func.func @transform_1(%arg0: i32, %arg1: i32) -> (i32, i32) {
    %c0_i32 = arith.constant 0 : i32
    return %arg0, %arg1 : i32, i32
  }
  func.func @transform_2(%arg0: i32, %arg1: i32) -> (i32, i32) {
    %c0_i32 = arith.constant 0 : i32
    %c0_i32_0 = arith.constant 0 : i32
    return %arg0, %c0_i32 : i32, i32
  }
  func.func @transform_3(%arg0: i32, %arg1: i32) -> (i32, i32) {
    %c0_i32 = arith.constant 0 : i32
    return %arg0, %arg1 : i32, i32
  }
  func.func @transform_4(%arg0: i32, %arg1: i32) -> (i32, i32) {
    %c0_i32 = arith.constant 0 : i32
    return %arg0, %arg1 : i32, i32
  }
}

</mosaic_0001>

<bundles_post_ra>
// kernel: tpu_custom_call.1
= control target key start
LH: loop header
LB: loop body
LE: loop exit
PB: predicated region body
PF: predicated region fallthrough
CT: control target
= control target key end

     0   :  { %s3090_s0 = inlined_call_operand.hbm [shape: f32[6,32], index: 0, kind: input, shape index: {}]   ;;  %s3091_s1 = inlined_call_operand.hbm [shape: f32[16,128], index: 1, kind: input, shape index: {}]   ;;  %s3092_s2 = inlined_call_operand.hbm [shape: f32[192,256], index: 2, kind: input, shape index: {}]   ;;  %s3093_s3 = inlined_call_operand.hbm [shape: f32[192,128], index: 3, kind: output, shape index: {0}]   ;;  %s3094_s4 = inlined_call_operand.hbm [shape: f32[16,128], index: 4, kind: output, shape index: {1}]  }
   0x1   :  { %3106 = sst [smem:[#allocation26_spill]] %s3090_s0 }
   0x2   :  { %3107 = sst [smem:[#allocation27_spill]] %s3091_s1 }
   0x3   :  { %3108 = sst [smem:[#allocation28_spill]] %s3092_s2 }
   0x4   :  { %10 = vsyncpa [#allocation5], 0 }
   0x5   :  { %11 = vsyncpa [#allocation3], 0 }
   0x6   :  { %13 = vsyncpa [#allocation3 + $0x1], 0 }
   0x7   :  { %14 = vsyncpa [#allocation8], 0 }
   0x8   :  { %16 = vsyncpa [#allocation8 + $0x1], 0 }
   0x9   :  { %17 = vsyncpa [#allocation4], 0 }
   0xa   :  { %19 = vsyncpa [#allocation4 + $0x1], 0 }
   0xb   :  { %20 = vsyncpa [#allocation11], 0 }
   0xc   :  { %22 = vsyncpa [#allocation11 + $0x1], 0  ;;  %s2032_s15 = smov 0   ;;  %s2034_s16 = smov 0  }
   0xd   :  { %s2036_s17 = smov 0   ;;  %s2038_s18 = smov 0  }
   0xe   :  { %s2040_s19 = smov 0   ;;  %s2042_s20 = smov 0  }
   0xf LB: > { %3109 = sst [smem:[#allocation17_spill]] %s1979_s15  ;;  %s1631_s21 = sadd.s32 4294967295, %s1999_s20   ;;  %s1999_s20 = sphi %s2042_s20, %s28_s20   ;;  %s1995_s19 = sphi %s2040_s19, %s3172_s19   ;;  %s1991_s18 = sphi %s2038_s18, %s3171_s18   ;;  %s1987_s17 = sphi %s2036_s17, %s3170_s17   ;;  %s1983_s16 = sphi %s2034_s16, %s3169_s16   ;;  %s1979_s15 = sphi %s2032_s15, %s3168_s15  }
  0x10   : > { %3110 = sst [smem:[#allocation18_spill]] %s1983_s16  ;;  %s1632_s22 = sadd.s32 4294967294, %s1999_s20  }
  0x11   : > { %3111 = sst [smem:[#allocation19_spill]] %s1987_s17  ;;  %p83_p0 = scmp.ne.s32.totalorder %s1983_s16, %s1979_s15 }
  0x12   : > { %3112 = sst [smem:[#allocation20_spill]] %s1995_s19  ;;  %p2066_p1 = scmp.eq.s32.totalorder %s1631_s21, 0 }
  0x13   : > { %3113 = sst [smem:[#allocation21_spill]] %s1999_s20  ;;  %p2070_p2 = scmp.eq.s32.totalorder %s1631_s21, 1 }
  0x14   : > { %p141_p3 = scmp.eq.s32.totalorder %s1632_s22, 1  ;;  %p2076_p4 = por %p2066_p1, %p83_p0 }
  0x15   : > { %p1633_p5 = scmp.ge.s32.totalorder %s1999_s20, 1  ;;  %p176_p7 = scmp.lt.s32.totalorder %s1999_s20, 3 }
  0x16   : > { %p2081_p6 = por %p141_p3, %p83_p0  ;;  %s3119_s0 = sld [smem:[#allocation26_spill]] }
  0x17   : > { %p2089_p8 = pnand %p1633_p5, %p176_p7  ;;  %s40_s5 = sadd.s32 1, %s1995_s19 }
  0x18   : > { %s3117_s26 = scalar_select %p2081_p6, 1, 0 }
  0x19   : > { %p1720_p10 = pneg %p2089_p8  ;;  %s70_s6 = sadd.s32 1, %s1987_s17 }
  0x1a   : > { %3118 = sst [smem:[#allocation22_spill]] %s3117_s26  ;;  %p42_p12 = scmp.ge.s32.totalorder %s40_s5, 2 }
  0x1b   : > { %p1721_p11 = pnand %p1720_p10, %p2066_p1  ;;  %s2001_s7 = smov [#allocation2]  }
  0x1c   : > { %s188_s29 = sshll.u32 %s3119_s0, 4  ;;  %s3174_s5 = smov (%p42_p12, %s40_s5), 0  ;;  %s189_s29 = int_to_ptr.hbm [resolvable:$true] %s188_s29 }
  0x1d   : > { %1723 = dma.hbm_to_smem (!%p1721_p11), %s189_s29, 128, %s2001_s7, [#allocation5]  }
  0x1e   : > { %3121 = sst [smem:[#allocation23_spill]] %s3174_s5  ;;  %p77_p13 = scmp.ne.s32.totalorder %s1987_s17, %s1983_s16 }
  0x1f   : > { %p78_p0 = scmp.eq.s32.totalorder %s1999_s20, 0  ;;  %s65_s8 = ssub.s32 %s1995_s19, %s3174_s5 }
  0x20   : > { %p1739_p3 = scmp.lt.s32.totalorder %s1999_s20, 2  ;;  %p68_p5 = scmp.eq.s32.totalorder %s65_s8, 0 }
  0x21   : > { %p79_p7 = por %p78_p0, %p77_p13  ;;  %p2110_p9 = por %p2070_p2, %p77_p13 }
  0x22   : > { %s2115_s10 = sand.u32 1, %s1987_s17   ;;  %s1637_s13 = sshll.u32 %s1995_s19, 3 }
  0x23   : > { %s3122_s9 = scalar_select %p2110_p9, 1, 0 }
  0x24   : > { %s2118_s11 = scalar_select %p68_p5, %s1987_s17, %s70_s6  }
  0x25   : > { %3123 = sst [smem:[#allocation24_spill]] %s3122_s9  ;;  %s1636_s12 = sshll.u32 %s2115_s10, 3 }
  0x26   : > { %3124 = sst [smem:[#allocation25_spill]] %s2118_s11  ;;  %s203_s27 = scalar_lea.vmem [#allocation6], %s1636_s12 }
  0x27   : > { %s3125_s1 = sld [smem:[#allocation27_spill]]  ;;  %s212_s24 = sshll.u32 %s203_s27, 4  ;;  %s213_s24 = int_to_ptr.vmem [resolvable:$true] %s212_s24 }
  0x28   : > { %p2127_p2 = pnand %p1739_p3, %p79_p7  ;;  %s1693_s6 = smul.u32 192, %s2115_s10 }
  0x29   : > { %s1674_s7 = smul.u32 192, %s1995_s19  ;;  %s200_s8 = scalar_lea.sflag [#allocation3], %s2115_s10 }
  0x2a   : > { %s3127_s2 = sld [smem:[#allocation28_spill]]  ;;  %s220_s0 = scalar_lea.sflag [#allocation8], %s2115_s10 }
  0x2b   : > { %s2003_s5 = smov 16  }
  0x2d   : > { %s208_s22 = scalar_lea.hbm %s3125_s1, %s1637_s13  ;;  %s2002_s1 = smov 256  }
  0x2e   : > { %s210_s28 = sshll.u32 %s208_s22, 4  ;;  %s223_s22 = scalar_lea.vmem [#allocation7], %s1693_s6  ;;  %s211_s28 = int_to_ptr.hbm [resolvable:$true] %s210_s28 }
  0x2f   : > { %1727 = dma.hbm_to_vmem [thread:$0]  (!%p2127_p2), %s211_s28, 128, %s213_s24, %s200_s8  }
  0x30   : > { %s229_s12 = scalar_lea.hbm %s3127_s2, %s1674_s7  ;;  %s232_s27 = sshll.u32 %s223_s22, 4  ;;  %s233_s27 = int_to_ptr.vmem [resolvable:$true] %s232_s27 }
  0x31   : > { %s230_s21 = sshll.u32 %s229_s12, 4  ;;  %244 = sbr.rel (%p2089_p8) target bundleno = 484 (0x1e4), region = 32  ;;  %s231_s21 = int_to_ptr.hbm [resolvable:$true] %s230_s21 }
  0x32   : > { %1730 = dma.hbm_to_vmem [thread:$0]  (!%p2127_p2), %s231_s21, 3072, %s233_s27, %s220_s0, %s2002_s1, %s2002_s1, %s2003_s5  }
  0x36   : > { %1958 = dma.done.wait (%p2066_p1), [#allocation5], 128  }
  0x37   : > { %1960 = vsyncadd (%p2066_p1), [#allocation5], 4294967168  ;;  %s2149_s24 = sand.u32 1, %s1983_s16  }
  0x38   : > { %s3096_s10 = sshll.u32 %s2149_s24, 3  ;;  %s252_s28 = scalar_lea.sflag [#allocation3], %s2149_s24 }
  0x39   : > { %s255_s0 = scalar_lea.vmem [#allocation6], %s3096_s10 }
  0x3a   : > { %1962 = dma.done.wait (%p2076_p4), %s252_s28, 128  }
  0x3b   : > { %1964 = vsyncadd (%p2076_p4), %s252_s28, 4294967168  ;;  %s1694_s1 = smul.u32 192, %s2149_s24  ;;  %s262_s23 = scalar_lea.sflag [#allocation8], %s2149_s24 }
  0x3d   : > { %s2161_s30 = scalar_lea.vmem [#allocation7], %s1694_s1 }
  0x3e   : > { %1966 = dma.done.wait (%p2076_p4), %s262_s23, 3072  }
  0x3f   : > { %1968 = vsyncadd (%p2076_p4), %s262_s23, 4294964224 }
  0x40   : > { %271 = sfence }
  0x41   : > { %s2168_s5 = smul.u32 384, %s1991_s18  ;;  %v2183_v0 = vld [vmem:[%s255_s0] sm:$0x1]  ;;  %v2188_v1 = vld [vmem:[%s255_s0 + $0x1] sm:$0x1] }
  0x42   : > { %v2191_v2 = vld [vmem:[%s255_s0 + $0x2] sm:$0x1] }
  0x43   : > { %s313_s29 = sadd.s32 1, %s2168_s5  ;;  %s2172_s6 = sld [smem:[#allocation2 + %s2168_s5]] }
  0x44   : > { %s2174_s7 = sld [smem:[#allocation2 + %s313_s29]]  ;;  %s317_s25 = sadd.s32 3, %s2168_s5 }
  0x45   : > { %s319_s8 = sadd.s32 4, %s2168_s5  ;;  %s323_s14 = sadd.s32 6, %s2168_s5 }
  0x46   : > { %s324_s13 = sld [smem:[#allocation2 + %s323_s14]]  ;;  %s325_s12 = sadd.s32 7, %s2168_s5 }
  0x47   : > { %s326_s21 = sld [smem:[#allocation2 + %s325_s12]]  ;;  %s327_s22 = sadd.s32 8, %s2168_s5 }
  0x48   : > { %s328_s27 = sld [smem:[#allocation2 + %s327_s22]]  ;;  %s333_s23 = sadd.s32 11, %s2168_s5 }
  0x49   : > { %s2181_s28 = sld [smem:[#allocation2 + %s317_s25]]  ;;  %s315_s29 = sadd.s32 2, %s2168_s5  ;;  %v359_v11 = vstv %s2172_s6 }
  0x4a   : > { %s2185_s1 = sld [smem:[#allocation2 + %s319_s8]]  ;;  %s321_s14 = sadd.s32 5, %s2168_s5  ;;  %v361_v13 = vstv %s2174_s7  ;;  %v360_v17 = vmul.f32 %v359_v11, %v2183_v0 }
  0x4b   : > { %s334_s10 = sld [smem:[#allocation2 + %s333_s23]]  ;;  %s329_s8 = sadd.s32 9, %s2168_s5  ;;  %v362_v18 = vmul.f32 %v361_v13, %v2188_v1 }
  0x4c   : > { %v379_v3 = vstv %s324_s13  ;;  %s2195_s25 = sld [smem:[#allocation2 + %s315_s29]]  ;;  %s331_s0 = sadd.s32 10, %s2168_s5 }
  0x4d   : > { %v380_v4 = vmul.f32 %v379_v3, %v2183_v0  ;;  %v381_v5 = vstv %s326_s21  ;;  %s2199_s12 = sld [smem:[#allocation2 + %s321_s14]]  ;;  %s335_s13 = sadd.s32 12, %s2168_s5  ;;  %v363_v23 = vadd.f32 %v362_v18, %v360_v17 }
  0x4e   : > { %v382_v6 = vmul.f32 %v381_v5, %v2188_v1  ;;  %v384_v7 = vstv %s328_s27  ;;  %s2204_s22 = sld [smem:[#allocation2 + %s329_s8]]  ;;  %s337_s21 = sadd.s32 13, %s2168_s5 }
  0x4f   : > { %v385_v8 = vmul.f32 %v384_v7, %v2191_v2  ;;  %s2207_s23 = sld [smem:[#allocation2 + %s331_s0]]  ;;  %s339_s29 = sadd.s32 14, %s2168_s5  ;;  %v369_v14 = vstv %s2181_s28 }
  0x50   : > { %v383_v9 = vadd.f32 %v382_v6, %v380_v4  ;;  %s2211_s27 = sld [smem:[#allocation2 + %s335_s13]]  ;;  %s341_s14 = sadd.s32 15, %s2168_s5  ;;  %v371_v15 = vstv %s2185_s1  ;;  %v370_v19 = vmul.f32 %v369_v14, %v2183_v0 }
  0x51   : > { %v387_v10 = vstv %s334_s10  ;;  %s2217_s8 = sld [smem:[#allocation2 + %s337_s21]]  ;;  %s343_s2 = sadd.s32 16, %s2168_s5  ;;  %v372_v20 = vmul.f32 %v371_v15, %v2188_v1 }
  0x52   : > { %v386_v12 = vadd.f32 %v385_v8, %v383_v9  ;;  %s2220_s10 = sld [smem:[#allocation2 + %s339_s29]]  ;;  %s345_s0 = sadd.s32 17, %s2168_s5  ;;  %v364_v21 = vstv %s2195_s25 }
  0x53   : > { %s2224_s6 = sld [smem:[#allocation2 + %s341_s14]]  ;;  %s347_s13 = sadd.s32 18, %s2168_s5  ;;  %v374_v22 = vstv %s2199_s12  ;;  %v365_v24 = vmul.f32 %v364_v21, %v2191_v2  ;;  %v373_v25 = vadd.f32 %v372_v20, %v370_v19 }
  0x54   : > { %v388_v16 = vadd.f32 %v387_v10, %v386_v12  ;;  %s2230_s7 = sld [smem:[#allocation2 + %s343_s2]]  ;;  %s349_s28 = sadd.s32 19, %s2168_s5  ;;  %v375_v26 = vmul.f32 %v374_v22, %v2191_v2  ;;  %v367_v34 = vstv %s2204_s22 }
  0x55   : > { %s2235_s1 = sld [smem:[#allocation2 + %s345_s0]]  ;;  %s353_s21 = sadd.s32 21, %s2168_s5  ;;  %v366_v29 = vadd.f32 %v365_v24, %v363_v23  ;;  %v377_v35 = vstv %s2207_s23 }
  0x56   : > { %1796 = vrcp.f32 %v388_v16  ;;  %s2238_s29 = sld [smem:[#allocation2 + %s347_s13]]  ;;  %s2241_s14 = sadd.s32 128, %s2168_s5  ;;  %v376_v30 = vadd.f32 %v375_v26, %v373_v25  ;;  %v400_v31 = vand.u32 2147483648, %v388_v16  ;;  %vm394_vm0 = vweird.f32 %v388_v16 }
  0x57   : > { %s2243_s19 = sld [smem:[#allocation2 + %s349_s28]]  ;;  %s676_s2 = sadd.s32 1, %s2241_s14  ;;  %v398_v33 = vand.u32 2147483647, %v388_v16  ;;  %v368_v39 = vadd.f32 %v367_v34, %v366_v29  ;;  %v405_v43 = vstv %s2211_s27  ;;  %v410_v46 = vstv %s2217_s8 }
  0x58   : > { %s2248_s25 = sld [smem:[#allocation2 + %s353_s21]]  ;;  %s680_s13 = sadd.s32 3, %s2241_s14  ;;  %v401_v38 = vor.u32 1.1754944e-38, %v400_v31  ;;  %v378_v40 = vadd.f32 %v377_v35, %v376_v30  ;;  %v407_v53 = vstv %s2220_s10 }
  0x59   : > { %s2251_s12 = sld [smem:[#allocation2 + %s2241_s14]]  ;;  %s682_s28 = sadd.s32 4, %s2241_s14  ;;  %vm399_vm3 = vcmp.eq.f32.partialorder %v398_v33, 8.507059e+37  ;;  %v412_v54 = vstv %s2224_s6 }
  0x5a   : > { %s2253_s0 = sld [smem:[#allocation2 + %s676_s2]]  ;;  %s686_s11 = sadd.s32 6, %s2241_s14 }
  0x5b   : > { %s687_s21 = sld [smem:[#allocation2 + %s686_s11]]  ;;  %s688_s17 = sadd.s32 7, %s2241_s14 }
  0x5c   : > { %v1797_v27 = vpop.eup %1796  ;;  %s2261_s2 = sld [smem:[#allocation2 + %s688_s17]]  ;;  %s690_s16 = sadd.s32 8, %s2241_s14  ;;  %v431_v59 = vstv %s2238_s29 }
  0x5d   : > { %v390_v28 = vmul.f32 %v1797_v27, %v388_v16  ;;  %vm395_vm1 = vweird.f32 %v1797_v27  ;;  %s355_s20 = sadd.s32 22, %s2168_s5  ;;  %s2265_s26 = sld [smem:[#allocation2 + %s690_s16]]  ;;  %v433_v5 = vstv %s2243_s19 }
  0x5e   : > { %vm2267_vm2 = vmor %vm394_vm0, %vm395_vm1  ;;  %s678_s11 = sadd.s32 2, %s2241_s14  ;;  %s2272_s22 = sld [smem:[#allocation2 + %s680_s13]]  ;;  %v438_v11 = vstv %s2248_s25 }
  0x5f   : > { %v391_v32 = vsub.f32 1.0, %v390_v28  ;;  %s2274_s17 = sld [smem:[#allocation2 + %s682_s28]]  ;;  %s696_s16 = sadd.s32 11, %s2241_s14  ;;  %v722_v60 = vstv %s2251_s12 }
  0x60   : > { %s2277_s23 = sld [smem:[#allocation2 + %s696_s16]]  ;;  %s684_s13 = sadd.s32 5, %s2241_s14  ;;  %v724_v3 = vstv %s2253_s0  ;;  %v723_v13 = vmul.f32 %v722_v60, %v2183_v0 }
  0x61   : > { %v392_v36 = vmul.f32 %v1797_v27, %v391_v32  ;;  %s2279_s15 = sld [smem:[#allocation2 + %s355_s20]]  ;;  %v742_v44 = vstv %s687_s21  ;;  %s351_s9 = sadd.s32 20, %s2168_s5  ;;  %v725_v14 = vmul.f32 %v724_v3, %v2188_v1 }
  0x62   : > { %s2287_s28 = sld [smem:[#allocation2 + %s678_s11]]  ;;  %v743_v47 = vmul.f32 %v742_v44, %v2183_v0  ;;  %v744_v48 = vstv %s2261_s2  ;;  %s357_s20 = sadd.s32 23, %s2168_s5 }
  0x63   : > { %v393_v41 = vadd.f32 %v1797_v27, %v392_v36  ;;  %s425_s16 = smax.f32 %s2235_s1, %s2230_s7  ;;  %v745_v51 = vmul.f32 %v744_v48, %v2188_v1  ;;  %v747_v52 = vstv %s2265_s26  ;;  %s2298_s27 = sld [smem:[#allocation2 + %s684_s13]]  ;;  %v726_v28 = vadd.f32 %v725_v14, %v723_v13 }
  0x64   : > { %v748_v55 = vmul.f32 %v747_v52, %v2191_v2  ;;  %s2301_s8 = sld [smem:[#allocation2 + %s351_s9]]  ;;  %v427_v58 = vstv %s425_s16  ;;  %s692_s26 = sadd.s32 9, %s2241_s14  ;;  %v732_v6 = vstv %s2272_s22  ;;  %v307_v52 = vlaneseq }
  0x65   : > { %v397_v42 = vsel %vm2267_vm2, %v1797_v27, %v393_v41  ;;  %s2303_s21 = sld [smem:[#allocation2 + %s357_s20]]  ;;  %v746_v61 = vadd.f32 %v745_v51, %v743_v47  ;;  %v734_v7 = vstv %s2274_s17  ;;  %s694_s9 = sadd.s32 10, %s2241_s14  ;;  %v733_v19 = vmul.f32 %v732_v6, %v2183_v0 }
  0x66   : > { %v402_v45 = vsel %vm399_vm3, %v401_v38, %v397_v42  ;;  %v750_v4 = vstv %s2277_s23  ;;  %s2322_s10 = sld [smem:[#allocation2 + %s692_s26]]  ;;  %v735_v20 = vmul.f32 %v734_v7, %v2188_v1  ;;  %s698_s19 = sadd.s32 12, %s2241_s14  ;;  %v2371_v3 = vshrl.u32 %v307_v52, 7 }
  0x67   : > { %v404_v49 = vmul.f32 %v402_v45, %v368_v39  ;;  %v409_v50 = vmul.f32 %v402_v45, %v378_v40  ;;  %v749_v8 = vadd.f32 %v748_v55, %v746_v61  ;;  %v440_v12 = vstv %s2279_s15  ;;  %s2331_s15 = sld [smem:[#allocation2 + %s694_s9]]  ;;  %s700_s6 = sadd.s32 13, %s2241_s14 }
  0x68   : > { %v727_v15 = vstv %s2287_s28  ;;  %v736_v32 = vadd.f32 %v735_v20, %v733_v19  ;;  %s702_s29 = sadd.s32 14, %s2241_s14  ;;  %s2342_s25 = sld [smem:[#allocation2 + %s698_s19]] }
  0x69   : > { %v406_v56 = vmul.f32 %v405_v43, %v404_v49  ;;  %v411_v57 = vmul.f32 %v410_v46, %v409_v50  ;;  %v2327_v16 = vadd.f32 %v750_v4, %v749_v8  ;;  %v737_v21 = vstv %s2298_s27  ;;  %s706_s12 = sadd.s32 16, %s2241_s14  ;;  %s2345_s0 = sld [smem:[#allocation2 + %s700_s6]] }
  0x6a   : > { %v436_v26 = vstv %s2301_s8  ;;  %v728_v29 = vmul.f32 %v727_v15, %v2191_v2  ;;  %v738_v33 = vmul.f32 %v737_v21, %v2191_v2  ;;  %s708_s2 = sadd.s32 17, %s2241_s14  ;;  %s2349_s11 = sld [smem:[#allocation2 + %s702_s29]] }
  0x6b   : > { %v2307_v62 = vadd.f32 %v407_v53, %v406_v56  ;;  %v2309_v63 = vadd.f32 %v412_v54, %v411_v57  ;;  %1798 = vrcp.f32 %v2327_v16  ;;  %v443_v27 = vstv %s2303_s21  ;;  %s704_s22 = sadd.s32 15, %s2241_s14  ;;  %s2353_s17 = sld [smem:[#allocation2 + %s706_s12]] }
  0x6c   : > { %v729_v37 = vadd.f32 %v728_v29, %v726_v28  ;;  %v730_v38 = vstv %s2322_s10  ;;  %v739_v41 = vadd.f32 %v738_v33, %v736_v32  ;;  %vm757_vm4 = vweird.f32 %v2327_v16  ;;  %s2359_s23 = sld [smem:[#allocation2 + %s708_s2]]  ;;  %s710_s28 = sadd.s32 18, %s2241_s14 }
  0x6d   : > { %v426_v9 = vmax.f32 %v2307_v62, -1.0  ;;  %v429_v10 = vmax.f32 %v2309_v63, -1.0  ;;  %v740_v43 = vstv %s2331_s15  ;;  %v761_v44 = vand.u32 2147483647, %v2327_v16  ;;  %s2361_s13 = sld [smem:[#allocation2 + %s704_s22]]  ;;  %s716_s20 = sadd.s32 21, %s2241_s14 }
  0x6e   : > { %v763_v45 = vand.u32 2147483648, %v2327_v16  ;;  %v731_v53 = vadd.f32 %v730_v38, %v729_v37  ;;  %v741_v54 = vadd.f32 %v740_v43, %v739_v41  ;;  %s2367_s16 = sld [smem:[#allocation2 + %s710_s28]]  ;;  %s712_s8 = sadd.s32 19, %s2241_s14 }
  0x6f   : > { %v428_v17 = vmin.f32 %v427_v58, %v426_v9  ;;  %v430_v18 = vmin.f32 %v427_v58, %v429_v10  ;;  %vm762_vm7 = vcmp.eq.f32.partialorder %v761_v44, 8.507059e+37  ;;  %s2369_s27 = sld [smem:[#allocation2 + %s716_s20]]  ;;  %v773_v6 = vstv %s2345_s0  ;;  %s2377_s21 = sadd.s32 256, %s2168_s5 }
  0x70   : > { %v764_v55 = vor.u32 1.1754944e-38, %v763_v45  ;;  %s718_s26 = sadd.s32 22, %s2241_s14  ;;  %s720_s10 = sadd.s32 23, %s2241_s14 }
  0x71   : > { %v432_v22 = vmul.f32 %v431_v59, %v428_v17  ;;  %v434_v23 = vmul.f32 %v433_v5, %v430_v18  ;;  %v439_v24 = vmul.f32 %v438_v11, %v428_v17  ;;  %v441_v25 = vmul.f32 %v440_v12, %v430_v18  ;;  %v1799_v36 = vpop.eup %1798  ;;  %s2385_s15 = sld [smem:[#allocation2 + %s712_s8]]  ;;  %s1049_s19 = sadd.s32 6, %s2377_s21 }
  0x72   : > { %v753_v42 = vmul.f32 %v1799_v36, %v2327_v16  ;;  %vm758_vm5 = vweird.f32 %v1799_v36  ;;  %v768_v5 = vstv %s2342_s25  ;;  %s788_s9 = smax.f32 %s2359_s23, %s2353_s17  ;;  %v770_v11 = vstv %s2349_s11  ;;  %s2390_s5 = sld [smem:[#allocation2 + %s718_s26]] }
  0x73   : > { %v435_v30 = vadd.f32 %v434_v23, %v432_v22  ;;  %v442_v31 = vadd.f32 %v441_v25, %v439_v24  ;;  %vm759_vm6 = vmor %vm757_vm4, %vm758_vm5  ;;  %v775_v12 = vstv %s2361_s13  ;;  %v2388_v17 = vadd.s32 8, %v2371_v3  ;;  %s2395_s6 = sld [smem:[#allocation2 + %s720_s10]]  ;;  %s1039_s29 = sadd.s32 1, %s2377_s21 }
  0x74   : > { %v754_v48 = vsub.f32 1.0, %v753_v42  ;;  %v2392_v18 = vstv %s788_s9  ;;  %v794_v25 = vstv %s2367_s16  ;;  %s2405_s25 = sld [smem:[#allocation2 + %s2377_s21]]  ;;  %s1051_s12 = sadd.s32 7, %s2377_s21 }
  0x75   : > { %v437_v34 = vadd.f32 %v436_v26, %v435_v30  ;;  %v444_v35 = vadd.f32 %v443_v27, %v442_v31  ;;  %v801_v26 = vstv %s2369_s27  ;;  %s2408_s0 = sld [smem:[#allocation2 + %s1049_s19]]  ;;  %s714_s2 = sadd.s32 20, %s2241_s14 }
  0x76   : > { %v755_v51 = vmul.f32 %v1799_v36, %v754_v48  ;;  %s2411_s11 = sld [smem:[#allocation2 + %s1039_s29]]  ;;  %s1041_s13 = sadd.s32 2, %s2377_s21 }
  0x77   : > { %v445_v39 = vmul.f32 0.13333334, %v437_v34  ;;  %v449_v40 = vmul.f32 0.13333334, %v444_v35  ;;  %s2423_s22 = sld [smem:[#allocation2 + %s1051_s12]]  ;;  %s1043_s28 = sadd.s32 3, %s2377_s21 }
  0x78   : > { %v756_v58 = vadd.f32 %v1799_v36, %v755_v51  ;;  %s2441_s14 = sld [smem:[#allocation2 + %s714_s2]]  ;;  %v803_v51 = vstv %s2390_s5  ;;  %s1053_s20 = sadd.s32 8, %s2377_s21 }
  0x79   : > { %v1646_v46 = vadd.f32 -1.0, %v445_v39  ;;  %v1648_v47 = vadd.f32 -1.0, %v449_v40  ;;  %s2458_s16 = sld [smem:[#allocation2 + %s1041_s13]]  ;;  %s1045_s9 = sadd.s32 4, %s2377_s21 }
  0x7a   : > { %v760_v61 = vsel %vm759_vm6, %v1799_v36, %v756_v58  ;;  %s2464_s8 = sld [smem:[#allocation2 + %s1043_s28]]  ;;  %s1059_s5 = sadd.s32 11, %s2377_s21 }
  0x7b   : > { %v1647_v49 = vclamps-f32 %v1646_v46, 1.1  ;;  %v1649_v50 = vclamps-f32 %v1648_v47, 1.1  ;;  %v765_v4 = vsel %vm762_vm7, %v764_v55, %v760_v61  ;;  %v1105_v58 = vstv %s2408_s0  ;;  %s2472_s26 = sld [smem:[#allocation2 + %s1053_s20]]  ;;  %s1061_s0 = sadd.s32 12, %s2377_s21 }
  0x7c   : > { %v767_v7 = vmul.f32 %v765_v4, %v731_v53  ;;  %v772_v8 = vmul.f32 %v765_v4, %v741_v54  ;;  %s2488_s10 = sld [smem:[#allocation2 + %s1045_s9]]  ;;  %s1063_s2 = sadd.s32 13, %s2377_s21 }
  0x7d   : > { %v453_v56 = vadd.f32 1.0, %v1647_v49  ;;  %v455_v57 = vadd.f32 1.0, %v1649_v50  ;;  %v796_v50 = vstv %s2385_s15  ;;  %s1047_s15 = sadd.s32 5, %s2377_s21  ;;  %s2546_s19 = sld [smem:[#allocation2 + %s1059_s5]] }
  0x7e   : > { %v769_v15 = vmul.f32 %v768_v5, %v767_v7  ;;  %v774_v16 = vmul.f32 %v773_v6, %v772_v8  ;;  %v806_v5 = vstv %s2395_s6  ;;  %v1085_v6 = vstv %s2405_s25  ;;  %s2499_s27 = sld [smem:[#allocation2 + %s1047_s15]]  ;;  %s1055_s6 = sadd.s32 9, %s2377_s21 }
  0x7f   : > { %v454_v59 = vmul.f32 7.5, %v453_v56  ;;  %v456_v60 = vmul.f32 7.5, %v455_v57  ;;  %v1087_v7 = vstv %s2411_s11  ;;  %v1107_v8 = vstv %s2423_s22  ;;  %s2642_s29 = sld [smem:[#allocation2 + %s1055_s6]]  ;;  %s1057_s25 = sadd.s32 10, %s2377_s21 }
  0x80   : > { %v2398_v23 = vadd.f32 %v770_v11, %v769_v15  ;;  %v2400_v24 = vadd.f32 %v775_v12, %v774_v16  ;;  %v2484_v16 = vmul.f32 %v1105_v58, %v2183_v0  ;;  %v1090_v35 = vstv %s2458_s16  ;;  %s2656_s12 = sld [smem:[#allocation2 + %s1057_s25]]  ;;  %s1065_s11 = sadd.s32 14, %s2377_s21 }
  0x81   : > { %vm457_vm8 = vcmp.ne.f32.partialorder %v454_v59, %v454_v59  ;;  %vm459_vm9 = vcmp.ne.f32.partialorder %v456_v60, %v456_v60  ;;  %v1110_v39 = vstv %s2472_s26  ;;  %s2675_s22 = sld [smem:[#allocation2 + %s1061_s0]]  ;;  %s1069_s28 = sadd.s32 16, %s2377_s21 }
  0x82   : > { %v458_v9 = vsel %vm457_vm8, -2.0, %v454_v59  ;;  %v460_v10 = vsel %vm459_vm9, -2.0, %v456_v60  ;;  %v789_v53 = vmax.f32 %v2398_v23, -1.0  ;;  %v792_v54 = vmax.f32 %v2400_v24, -1.0  ;;  %s2678_s13 = sld [smem:[#allocation2 + %s1063_s2]]  ;;  %s1071_s16 = sadd.s32 17, %s2377_s21 }
  0x83   : > { %v461_v13 = vfloor.f32 %v458_v9  ;;  %v462_v14 = vfloor.f32 %v460_v10  ;;  %s2687_s20 = sld [smem:[#allocation2 + %s1065_s11]]  ;;  %s1073_s9 = sadd.s32 18, %s2377_s21 }
  0x84   : > { %v791_v61 = vmin.f32 %v2392_v18, %v789_v53  ;;  %v793_v4 = vmin.f32 %v2392_v18, %v792_v54  ;;  %s2698_s26 = sld [smem:[#allocation2 + %s1069_s28]]  ;;  %s1075_s15 = sadd.s32 19, %s2377_s21 }
  0x85   : > { %v463_v19 = vsub.f32 %v458_v9, %v461_v13  ;;  %v464_v20 = vsub.f32 %v460_v10, %v462_v14  ;;  %v1697_v21 = vcvt.f32.s32 %v461_v13  ;;  %v1699_v22 = vcvt.f32.s32 %v462_v14  ;;  %s2717_s5 = sld [smem:[#allocation2 + %s1073_s9]]  ;;  %s1077_s25 = sadd.s32 20, %s2377_s21 }
  0x86   : > { %v795_v11 = vmul.f32 %v794_v25, %v791_v61  ;;  %v797_v12 = vmul.f32 %v796_v50, %v793_v4  ;;  %v799_v13 = vstv %s2441_s14  ;;  %v802_v14 = vmul.f32 %v801_v26, %v791_v61  ;;  %s1067_s14 = sadd.s32 15, %s2377_s21  ;;  %s2723_s6 = sld [smem:[#allocation2 + %s1075_s15]] }
  0x87   : > { %v466_v27 = vadd.s32 1, %v1697_v21  ;;  %v468_v28 = vadd.s32 1, %v1699_v22  ;;  %v469_v29 = vperm.slane %v1697_v21, 0  ;;  %v472_v30 = vsub.f32 1.0, %v463_v19  ;;  %s1083_s0 = sadd.s32 23, %s2377_s21  ;;  %s1078_s2 = sld [smem:[#allocation2 + %s1077_s25]] }
  0x88   : > { %v479_v31 = vperm.slane %v463_v19, 0  ;;  %v484_v32 = vperm.slane %v1699_v22, 0  ;;  %v487_v33 = vsub.f32 1.0, %v464_v20  ;;  %v494_v34 = vperm.slane %v464_v20, 0  ;;  %s1897_s25 = scalar_lea.hbm %s3093_s3, 192 }
  0x89   : > { %vm2414_vm10 = vcmp.eq.s32.totalorder %v2371_v3, %v469_v29  ;;  %vm2419_vm11 = vcmp.eq.s32.totalorder %v2388_v17, %v469_v29  ;;  %v473_v37 = vperm.slane %v472_v30, 0  ;;  %v476_v38 = vperm.slane %v466_v27, 0 }
  0x8a   : > { %vm2426_vm12 = vcmp.eq.s32.totalorder %v2371_v3, %v484_v32  ;;  %v488_v40 = vperm.slane %v487_v33, 0  ;;  %v491_v41 = vperm.slane %v468_v28, 0  ;;  %vm2431_vm13 = vcmp.eq.s32.totalorder %v2388_v17, %v484_v32 }
  0x8b   : > { %v474_v43 = vsel %vm2414_vm10, %v473_v37, 0.0  ;;  %v475_v44 = vsel %vm2419_vm11, %v473_v37, 0.0  ;;  %vm477_vm14 = vcmp.eq.s32.totalorder %v2371_v3, %v476_v38  ;;  %vm478_vm15 = vcmp.eq.s32.totalorder %v2388_v17, %v476_v38 }
  0x8c   : > { %v480_v45 = vsel %vm477_vm14, %v479_v31, 0.0  ;;  %v481_v46 = vsel %vm478_vm15, %v479_v31, 0.0  ;;  %v489_v47 = vsel %vm2426_vm12, %v488_v40, 0.0  ;;  %vm492_vm0 = vcmp.eq.s32.totalorder %v2371_v3, %v491_v41 }
  0x8d   : > { %v495_v48 = vsel %vm492_vm0, %v494_v34, 0.0  ;;  %v490_v49 = vsel %vm2431_vm13, %v488_v40, 0.0  ;;  %vm493_vm1 = vcmp.eq.s32.totalorder %v2388_v17, %v491_v41  ;;  %v2460_v55 = vadd.f32 %v480_v45, %v474_v43 }
  0x8e   : > { %v2453_v52 = vadd.f32 %v495_v48, %v489_v47  ;;  %v2462_v56 = vadd.f32 %v481_v46, %v475_v44  ;;  %v496_v57 = vsel %vm493_vm1, %v494_v34, 0.0  ;;  %v804_v15 = vmul.f32 %v803_v51, %v793_v4 }
  0x8f   : > { %v2468_v60 = vadd.f32 %v496_v57, %v490_v49  ;;  %v798_v21 = vadd.f32 %v797_v12, %v795_v11  ;;  %v1086_v25 = vmul.f32 %v1085_v6, %v2183_v0  ;;  %v1088_v26 = vmul.f32 %v1087_v7, %v2188_v1 }
  0x90   : > { %v507_v59 = vrot.slane %v2453_v52, 7  ;;  %v805_v22 = vadd.f32 %v804_v15, %v802_v14  ;;  %v1108_v27 = vmul.f32 %v1107_v8, %v2188_v1  ;;  %v506_v33 = vrot.slane %v2453_v52, 6 }
  0x91   : > { %v514_v10 = vrot.slane %v2468_v60, 7  ;;  %v800_v31 = vadd.f32 %v799_v13, %v798_v21  ;;  %v513_v34 = vrot.slane %v2468_v60, 6  ;;  %v1095_v38 = vstv %s2464_s8  ;;  %s2691_s8 = sld [smem:[#allocation2 + %s1067_s14]] }
  0x92   : > { %v522_v9 = vperm.slane %v507_v59, 0  ;;  %v807_v32 = vadd.f32 %v806_v5, %v805_v22  ;;  %v521_v41 = vperm.slane %v506_v33, 0  ;;  %v2503_v43 = vadd.f32 %v1088_v26, %v1086_v25  ;;  %s1084_s14 = sld [smem:[#allocation2 + %s1083_s0]] }
  0x93   : > { %v530_v20 = vperm.slane %v514_v10, 0  ;;  %v808_v37 = vmul.f32 0.13333334, %v800_v31  ;;  %v529_v42 = vperm.slane %v513_v34, 0  ;;  %v505_v45 = vrot.slane %v2453_v52, 5 }
  0x94   : > { %v561_v18 = vmul.f32 %v522_v9, %v2460_v55  ;;  %v562_v19 = vmul.f32 %v522_v9, %v2462_v56  ;;  %v812_v40 = vmul.f32 0.13333334, %v807_v32  ;;  %v512_v46 = vrot.slane %v2468_v60, 5 }
  0x95   : > { %v577_v29 = vmul.f32 %v530_v20, %v2460_v55  ;;  %v578_v30 = vmul.f32 %v530_v20, %v2462_v56  ;;  %v1652_v44 = vadd.f32 -1.0, %v808_v37  ;;  %v2508_v47 = vmul.f32 %v1090_v35, %v2191_v2 }
  0x96   : > { %v586_v28 = vpack.c.bf16 %v562_v19, %v561_v18  ;;  %v1654_v48 = vadd.f32 -1.0, %v812_v40  ;;  %v559_v49 = vmul.f32 %v521_v41, %v2460_v55  ;;  %v560_v50 = vmul.f32 %v521_v41, %v2462_v56 }
  0x97   : > { %v594_v36 = vpack.c.bf16 %v578_v30, %v577_v29  ;;  %v575_v51 = vmul.f32 %v529_v42, %v2460_v55  ;;  %v1653_v53 = vclamps-f32 %v1652_v44, 1.1  ;;  %v576_v54 = vmul.f32 %v529_v42, %v2462_v56 }
  0x98   : > { %607 = vmatpush.bf16.msra.mxu0 %v586_v28  ;;  %v520_v57 = vperm.slane %v505_v45, 0  ;;  %v528_v58 = vperm.slane %v512_v46, 0  ;;  %v1655_v59 = vclamps-f32 %v1654_v48, 1.1  ;;  %v585_v61 = vpack.c.bf16 %v560_v50, %v559_v49 }
  0x99   : > { %626 = vmatpush.bf16.msra.mxu1 %v594_v36  ;;  %v2515_v4 = vmul.f32 %v1095_v38, %v2183_v0  ;;  %v1097_v5 = vstv %s2488_s10  ;;  %v816_v6 = vadd.f32 1.0, %v1653_v53  ;;  %v593_v7 = vpack.c.bf16 %v576_v54, %v575_v51  ;;  %s2702_s10 = sld [smem:[#allocation2 + %s1071_s16]] }
  0x9a   : > { %v557_v8 = vmul.f32 %v520_v57, %v2460_v55  ;;  %v558_v9 = vmul.f32 %v520_v57, %v2462_v56  ;;  %v818_v10 = vadd.f32 1.0, %v1655_v59  ;;  %v573_v11 = vmul.f32 %v528_v58, %v2460_v55 }
  0x9b   : > { %v574_v12 = vmul.f32 %v528_v58, %v2462_v56  ;;  %v504_v13 = vrot.slane %v2453_v52, 4  ;;  %v817_v14 = vmul.f32 7.5, %v816_v6  ;;  %v511_v0 = vrot.slane %v2468_v60, 4 }
  0x9c   : > { %608 = vmatpush.bf16.msra.mxu0 %v585_v61  ;;  %v584_v15 = vpack.c.bf16 %v558_v9, %v557_v8  ;;  %v1100_v18 = vstv %s2499_s27  ;;  %v819_v19 = vmul.f32 7.5, %v818_v10  ;;  %v1109_v22 = vadd.f32 %v1108_v27, %v2484_v16  ;;  %s1079_s27 = sadd.s32 21, %s2377_s21 }
  0x9d   : > { %627 = vmatpush.bf16.msra.mxu1 %v593_v7  ;;  %v592_v20 = vpack.c.bf16 %v574_v12, %v573_v11  ;;  %v519_v21 = vperm.slane %v504_v13, 0  ;;  %vm820_vm2 = vcmp.ne.f32.partialorder %v817_v14, %v817_v14  ;;  %v527_v25 = vperm.slane %v511_v0, 0 }
  0x9e   : > { %v503_v26 = vrot.slane %v2453_v52, 3  ;;  %v510_v28 = vrot.slane %v2468_v60, 3  ;;  %v821_v29 = vsel %vm820_vm2, -2.0, %v817_v14  ;;  %vm822_vm3 = vcmp.ne.f32.partialorder %v819_v19, %v819_v19 }
  0x9f   : > { %v555_v30 = vmul.f32 %v519_v21, %v2460_v55  ;;  %v556_v31 = vmul.f32 %v519_v21, %v2462_v56  ;;  %v823_v32 = vsel %vm822_vm3, -2.0, %v819_v19  ;;  %v824_v33 = vfloor.f32 %v821_v29  ;;  %s1151_s11 = smax.f32 %s2702_s10, %s2698_s26 }
  0xa0   : > { %609 = vmatpush.bf16.msra.mxu0 %v584_v15  ;;  %v571_v34 = vmul.f32 %v527_v25, %v2460_v55  ;;  %v572_v16 = vmul.f32 %v527_v25, %v2462_v56  ;;  %v825_v27 = vfloor.f32 %v823_v32  ;;  %v518_v36 = vperm.slane %v503_v26, 0 }
  0xa1   : > { %628 = vmatpush.bf16.msra.mxu1 %v592_v20  ;;  %v583_v35 = vpack.c.bf16 %v556_v31, %v555_v30  ;;  %v1111_v37 = vmul.f32 %v1110_v39, %v2191_v2  ;;  %v826_v38 = vsub.f32 %v821_v29, %v824_v33  ;;  %v1701_v40 = vcvt.f32.s32 %v824_v33 }
  0xa2   : > { %v591_v41 = vpack.c.bf16 %v572_v16, %v571_v34  ;;  %v526_v42 = vperm.slane %v510_v28, 0  ;;  %v827_v44 = vsub.f32 %v823_v32, %v825_v27  ;;  %v1703_v45 = vcvt.f32.s32 %v825_v27 }
  0xa3   : > { %v553_v46 = vmul.f32 %v518_v36, %v2460_v55  ;;  %v554_v48 = vmul.f32 %v518_v36, %v2462_v56  ;;  %v829_v49 = vadd.s32 1, %v1701_v40  ;;  %v832_v50 = vperm.slane %v1701_v40, 0 }
  0xa4   : > { %610 = vmatpush.bf16.msra.mxu0 %v583_v35  ;;  %v835_v51 = vsub.f32 1.0, %v826_v38  ;;  %v842_v53 = vperm.slane %v826_v38, 0  ;;  %v831_v54 = vadd.s32 1, %v1703_v45  ;;  %v847_v57 = vperm.slane %v1703_v45, 0 }
  0xa5   : > { %629 = vmatpush.bf16.msra.mxu1 %v591_v41  ;;  %v850_v39 = vsub.f32 1.0, %v827_v44  ;;  %v857_v58 = vperm.slane %v827_v44, 0  ;;  %vm2537_vm4 = vcmp.eq.s32.totalorder %v2371_v3, %v832_v50  ;;  %vm2542_vm5 = vcmp.eq.s32.totalorder %v2388_v17, %v832_v50 }
  0xa6   : > { %v836_v6 = vperm.slane %v835_v51, 0  ;;  %v839_v7 = vperm.slane %v829_v49, 0  ;;  %vm2549_vm6 = vcmp.eq.s32.totalorder %v2371_v3, %v847_v57  ;;  %v854_v10 = vperm.slane %v831_v54, 0 }
  0xa7   : > { %v851_v9 = vperm.slane %v850_v39, 0  ;;  %vm2554_vm7 = vcmp.eq.s32.totalorder %v2388_v17, %v847_v57  ;;  %v502_v21 = vrot.slane %v2453_v52, 2  ;;  %v1112_v25 = vadd.f32 %v1111_v37, %v1109_v22 }
  0xa8   : > { %v837_v12 = vsel %vm2537_vm4, %v836_v6, 0.0  ;;  %v838_v13 = vsel %vm2542_vm5, %v836_v6, 0.0  ;;  %vm840_vm8 = vcmp.eq.s32.totalorder %v2371_v3, %v839_v7  ;;  %vm841_vm9 = vcmp.eq.s32.totalorder %v2388_v17, %v839_v7 }
  0xa9   : > { %v843_v14 = vsel %vm840_vm8, %v842_v53, 0.0  ;;  %v844_v15 = vsel %vm841_vm9, %v842_v53, 0.0  ;;  %v852_v0 = vsel %vm2549_vm6, %v851_v9, 0.0  ;;  %vm855_vm10 = vcmp.eq.s32.totalorder %v2371_v3, %v854_v10 }
  0xaa   : > { %v858_v19 = vsel %vm855_vm10, %v857_v58, 0.0  ;;  %v853_v20 = vsel %vm2554_vm7, %v851_v9, 0.0  ;;  %vm856_vm11 = vcmp.eq.s32.totalorder %v2388_v17, %v854_v10  ;;  %v582_v28 = vpack.c.bf16 %v554_v48, %v553_v46 }
  0xab   : > { %v2570_v26 = vadd.f32 %v858_v19, %v852_v0  ;;  %v569_v29 = vmul.f32 %v526_v42, %v2460_v55  ;;  %v2574_v30 = vadd.f32 %v843_v14, %v837_v12  ;;  %v2576_v31 = vadd.f32 %v844_v15, %v838_v13 }
  0xac   : > { %v859_v32 = vsel %vm856_vm11, %v857_v58, 0.0  ;;  %v570_v33 = vmul.f32 %v526_v42, %v2462_v56  ;;  %611 = vmatpush.bf16.msra.mxu0 %v582_v28  ;;  %v517_v37 = vperm.slane %v502_v21, 0  ;;  %v1113_v38 = vstv %s2546_s19  ;;  %s1081_s19 = sadd.s32 22, %s2377_s21 }
  0xad   : > { %v870_v34 = vrot.slane %v2570_v26, 7  ;;  %v2580_v16 = vadd.f32 %v859_v32, %v853_v20  ;;  %v869_v22 = vrot.slane %v2570_v26, 6  ;;  %v868_v27 = vrot.slane %v2570_v26, 5 }
  0xae   : > { %v867_v35 = vrot.slane %v2570_v26, 4  ;;  %v590_v36 = vpack.c.bf16 %v570_v33, %v569_v29  ;;  %v866_v48 = vrot.slane %v2570_v26, 3  ;;  %v509_v49 = vrot.slane %v2468_v60, 2 }
  0xaf   : > { %v885_v40 = vperm.slane %v870_v34, 0  ;;  %v877_v41 = vrot.slane %v2580_v16, 7  ;;  %v884_v44 = vperm.slane %v869_v22, 0  ;;  %v876_v42 = vrot.slane %v2580_v16, 6 }
  0xb0   : > { %v883_v45 = vperm.slane %v868_v27, 0  ;;  %v875_v46 = vrot.slane %v2580_v16, 5  ;;  %630 = vmatpush.bf16.msra.mxu1 %v590_v36  ;;  %v882_v58 = vperm.slane %v867_v35, 0  ;;  %v874_v59 = vrot.slane %v2580_v16, 4 }
  0xb1   : > { %v924_v50 = vmul.f32 %v885_v40, %v2574_v30  ;;  %v925_v51 = vmul.f32 %v885_v40, %v2576_v31  ;;  %v893_v53 = vperm.slane %v877_v41, 0  ;;  %v922_v54 = vmul.f32 %v884_v44, %v2574_v30 }
  0xb2   : > { %v923_v57 = vmul.f32 %v884_v44, %v2576_v31  ;;  %v892_v39 = vperm.slane %v876_v42, 0  ;;  %v891_v8 = vperm.slane %v875_v46, 0  ;;  %v920_v11 = vmul.f32 %v883_v45, %v2574_v30 }
  0xb3   : > { %v949_v61 = vpack.c.bf16 %v925_v51, %v924_v50  ;;  %v940_v6 = vmul.f32 %v893_v53, %v2574_v30  ;;  %v941_v7 = vmul.f32 %v893_v53, %v2576_v31  ;;  %v921_v12 = vmul.f32 %v883_v45, %v2576_v31 }
  0xb4   : > { %v938_v9 = vmul.f32 %v892_v39, %v2574_v30  ;;  %v939_v10 = vmul.f32 %v892_v39, %v2576_v31  ;;  %v948_v14 = vpack.c.bf16 %v923_v57, %v922_v54  ;;  %v551_v15 = vmul.f32 %v517_v37, %v2460_v55 }
  0xb5   : > { %970 = vmatpush.bf16.msra.mxu2 %v949_v61  ;;  %v957_v13 = vpack.c.bf16 %v941_v7, %v940_v6  ;;  %v2606_v0 = vmul.f32 %v1097_v5, %v2188_v1  ;;  %v936_v19 = vmul.f32 %v891_v8, %v2574_v30  ;;  %v937_v20 = vmul.f32 %v891_v8, %v2576_v31 }
  0xb6   : > { %v890_v21 = vperm.slane %v874_v59, 0  ;;  %v2610_v28 = vadd.f32 %v1113_v38, %v1112_v25  ;;  %v956_v29 = vpack.c.bf16 %v939_v10, %v938_v9  ;;  %v873_v32 = vrot.slane %v2580_v16, 3 }
  0xb7   : > { %989 = vmatpush.bf16.msra.mxu3 %v957_v13  ;;  %v552_v33 = vmul.f32 %v517_v37, %v2462_v56  ;;  %v525_v34 = vperm.slane %v509_v49, 0  ;;  %v947_v22 = vpack.c.bf16 %v921_v12, %v920_v11  ;;  %v918_v27 = vmul.f32 %v882_v58, %v2574_v30 }
  0xb8   : > { %v919_v1 = vmul.f32 %v882_v58, %v2576_v31  ;;  %v881_v5 = vperm.slane %v866_v48, 0  ;;  %v934_v35 = vmul.f32 %v890_v21, %v2574_v30  ;;  %v935_v25 = vmul.f32 %v890_v21, %v2576_v31 }
  0xb9   : > { %971 = vmatpush.bf16.msra.mxu2 %v948_v14  ;;  %v581_v36 = vpack.c.bf16 %v552_v33, %v551_v15  ;;  %v567_v38 = vmul.f32 %v525_v34, %v2460_v55  ;;  %v889_v40 = vperm.slane %v873_v32, 0  ;;  %v568_v41 = vmul.f32 %v525_v34, %v2462_v56 }
  0xba   : > { %v865_v37 = vrot.slane %v2570_v26, 2  ;;  %v872_v44 = vrot.slane %v2580_v16, 2  ;;  %v955_v42 = vpack.c.bf16 %v937_v20, %v936_v19  ;;  %v501_v45 = vrot.slane %v2453_v52, 1 }
  0xbb   : > { %990 = vmatpush.bf16.msra.mxu3 %v956_v29  ;;  %612 = vmatpush.bf16.msra.mxu0 %v581_v36  ;;  %v2626_v46 = vmul.f32 %v1100_v18, %v2191_v2  ;;  %1800 = vrcp.f32 %v2610_v28  ;;  %v946_v48 = vpack.c.bf16 %v919_v1, %v918_v27  ;;  %v589_v49 = vpack.c.bf16 %v568_v41, %v567_v38  ;;  %v595_v1 = vld [vmem:[%s2161_s30] sm:$0xff] }
  0xbc   : > { %v880_v50 = vperm.slane %v865_v37, 0  ;;  %v508_v51 = vrot.slane %v2468_v60, 1  ;;  %v916_v53 = vmul.f32 %v881_v5, %v2574_v30  ;;  %v917_v54 = vmul.f32 %v881_v5, %v2576_v31  ;;  %v597_v5 = vld [vmem:[%s2161_s30 + $0x10] sm:$0xff] }
  0xbd   : > { %972 = vmatpush.bf16.msra.mxu2 %v947_v22  ;;  %v516_v57 = vperm.slane %v501_v45, 0  ;;  %v864_v39 = vrot.slane %v2570_v26, 1  ;;  %v954_v58 = vpack.c.bf16 %v935_v25, %v934_v35  ;;  %v932_v2 = vmul.f32 %v889_v40, %v2574_v30  ;;  %631 = vmatpush.bf16.msra.mxu1 %v589_v49 }
  0xbe   : > { %v933_v18 = vmul.f32 %v889_v40, %v2576_v31  ;;  %v888_v59 = vperm.slane %v872_v44, 0  ;;  %v524_v7 = vperm.slane %v508_v51, 0  ;;  %v871_v8 = vrot.slane %v2580_v16, 1  ;;  %v596_v44 = vld [vmem:[%s2161_s30 + $0x8] sm:$0xff] }
  0xbf   : > { %991 = vmatpush.bf16.msra.mxu3 %v955_v42  ;;  %v549_v61 = vmul.f32 %v516_v57, %v2460_v55  ;;  %v550_v6 = vmul.f32 %v516_v57, %v2462_v56  ;;  %v914_v9 = vmul.f32 %v880_v50, %v2574_v30  ;;  %v915_v10 = vmul.f32 %v880_v50, %v2576_v31  ;;  %v598_v42 = vld [vmem:[%s2161_s30 + $0x18] sm:$0xff] }
  0xc0   : > { %v879_v11 = vperm.slane %v864_v39, 0  ;;  %v515_v12 = vperm.slane %v2453_v52, 0  ;;  %v945_v14 = vpack.c.bf16 %v917_v54, %v916_v53  ;;  %v565_v19 = vmul.f32 %v524_v7, %v2460_v55 }
  0xc1   : > { %v2645_v13 = vpop.eup %1800  ;;  %973 = vmatpush.bf16.msra.mxu2 %v946_v48  ;;  %v580_v15 = vpack.c.bf16 %v550_v6, %v549_v61  ;;  %v566_v20 = vmul.f32 %v524_v7, %v2462_v56  ;;  %v953_v21 = vpack.c.bf16 %v933_v18, %v932_v2  ;;  %v930_v29 = vmul.f32 %v888_v59, %v2574_v30  ;;  %v958_v6 = vld [vmem:[%s2161_s30 + $0x40] sm:$0xff]  ;;  %v960_v7 = vld [vmem:[%s2161_s30 + $0x50] sm:$0xff] }
  0xc2   : > { %v931_v52 = vmul.f32 %v888_v59, %v2576_v31  ;;  %v547_v32 = vmul.f32 %v515_v12, %v2460_v55  ;;  %v887_v34 = vperm.slane %v871_v8, 0  ;;  %v548_v22 = vmul.f32 %v515_v12, %v2462_v56  ;;  %v961_v12 = vld [vmem:[%s2161_s30 + $0x58] sm:$0xff] }
  0xc3   : > { %992 = vmatpush.bf16.msra.mxu3 %v954_v58  ;;  %613 = vmatpush.bf16.msra.mxu0 %v580_v15  ;;  %v588_v33 = vpack.c.bf16 %v566_v20, %v565_v19  ;;  %v523_v27 = vperm.slane %v2468_v60, 0  ;;  %v944_v35 = vpack.c.bf16 %v915_v10, %v914_v9  ;;  %v912_v25 = vmul.f32 %v879_v11, %v2574_v30 }
  0xc4   : > { %v913_v36 = vmul.f32 %v879_v11, %v2576_v31  ;;  %v1099_v38 = vadd.f32 %v2606_v0, %v2515_v4  ;;  %v579_v40 = vpack.c.bf16 %v548_v22, %v547_v32  ;;  %v878_v37 = vperm.slane %v2570_v26, 0 }
  0xc5   : > { %974 = vmatpush.bf16.msra.mxu2 %v945_v14  ;;  %632 = vmatpush.bf16.msra.mxu1 %v588_v33  ;;  %v563_v60 = vmul.f32 %v523_v27, %v2460_v55  ;;  %v564_v41 = vmul.f32 %v523_v27, %v2462_v56  ;;  %v952_v45 = vpack.c.bf16 %v931_v52, %v930_v29  ;;  %v886_v26 = vperm.slane %v2580_v16, 0 }
  0xc6   : > { %v603_v48 = vpack.c.bf16 %v597_v5, %v595_v1  ;;  %v1092_v4 = vadd.f32 %v2508_v47, %v2503_v43  ;;  %v928_v0 = vmul.f32 %v887_v34, %v2574_v30  ;;  %v929_v55 = vmul.f32 %v887_v34, %v2576_v31 }
  0xc7   : > { %993 = vmatpush.bf16.msra.mxu3 %v953_v21  ;;  %614 = vmatpush.bf16.msra.mxu0 %v579_v40  ;;  %v587_v56 = vpack.c.bf16 %v564_v41, %v563_v60  ;;  %v604_v49 = vpack.c.bf16 %v598_v42, %v596_v44  ;;  %v1093_v50 = vstv %s2642_s29  ;;  %v1102_v43 = vadd.f32 %v2626_v46, %v1099_v38  ;;  %s2725_s29 = sld [smem:[#allocation2 + %s1079_s27]]  ;;  %s1442_s27 = scalar_lea.sflag [#allocation4], %s2149_s24 }
  0xc8   : > { %v1116_v47 = vmul.f32 %v2645_v13, %v2610_v28  ;;  %v943_v51 = vpack.c.bf16 %v913_v36, %v912_v25  ;;  %v910_v53 = vmul.f32 %v878_v37, %v2574_v30  ;;  %v911_v16 = vmul.f32 %v878_v37, %v2576_v31 }
  0xc9   : > { %975 = vmatpush.bf16.msra.mxu2 %v944_v35  ;;  %633 = vmatpush.bf16.msra.mxu1 %v587_v56  ;;  %v1126_v54 = vand.u32 2147483648, %v2610_v28  ;;  %vm1120_vm12 = vweird.f32 %v2610_v28  ;;  %vm1121_vm13 = vweird.f32 %v2645_v13  ;;  %v1124_v57 = vand.u32 2147483647, %v2610_v28  ;;  %v959_v28 = vld [vmem:[%s2161_s30 + $0x48] sm:$0xff] }
  0xca   : > { %615 = vmatmul.bf16.vlgmr.msra.gmra.mxu0 %v603_v48  ;;  %v1117_v46 = vsub.f32 1.0, %v1116_v47  ;;  %v951_v39 = vpack.c.bf16 %v929_v55, %v928_v0  ;;  %v926_v58 = vmul.f32 %v886_v26, %v2574_v30  ;;  %v927_v2 = vmul.f32 %v886_v26, %v2576_v31  ;;  %vm2713_vm14 = vmor %vm1120_vm12, %vm1121_vm13 }
  0xcb   : > { %994 = vmatpush.bf16.msra.mxu3 %v952_v45  ;;  %v1103_v18 = vstv %s2656_s12  ;;  %v942_v61 = vpack.c.bf16 %v911_v16, %v910_v53  ;;  %v1127_v31 = vor.u32 1.1754944e-38, %v1126_v54  ;;  %v1094_v8 = vadd.f32 %v1093_v50, %v1092_v4  ;;  %s2731_s12 = sld [smem:[#allocation2 + %s1081_s19]] }
  0xcc   : > { %634 = vmatmul.bf16.vlgmr.msra.gmra.mxu1 %v604_v49  ;;  %v1118_v59 = vmul.f32 %v2645_v13, %v1117_v46  ;;  %v1104_v9 = vadd.f32 %v1103_v18, %v1102_v43  ;;  %vm1125_vm15 = vcmp.eq.f32.partialorder %v1124_v57, 8.507059e+37  ;;  %v950_v11 = vpack.c.bf16 %v927_v2, %v926_v58 }
  0xcd   : > { %976 = vmatpush.bf16.msra.mxu2 %v943_v51  ;;  %v966_v14 = vpack.c.bf16 %v960_v7, %v958_v6  ;;  %v1131_v20 = vstv %s2675_s22  ;;  %v1136_v21 = vstv %s2678_s13  ;;  %v967_v29 = vpack.c.bf16 %v961_v12, %v959_v28  ;;  %s1664_s22 = sshll.u32 %s1991_s18, 3 }
  0xce   : > { %v1119_v10 = vadd.f32 %v2645_v13, %v1118_v59  ;;  %v1133_v33 = vstv %s2687_s20  ;;  %v1138_v34 = vstv %s2691_s8  ;;  %v1153_v5 = vstv %s1151_s11  ;;  %s1476_s16 = scalar_lea.hbm %s3094_s4, %s1664_s22 }
  0xcf   : > { %995 = vmatpush.bf16.msra.mxu3 %v951_v39  ;;  %v1157_v36 = vstv %s2717_s5  ;;  %v1159_v38 = vstv %s2723_s6  ;;  %v1164_v40 = vstv %s2725_s29  ;;  %v1162_v4 = vstv %s1078_s2  ;;  %s1480_s15 = sshll.u32 %s1476_s16, 4  ;;  %s3036_s15 = int_to_ptr.hbm [resolvable:$true] %s1480_s15 }
  0xd0   : > { %v1123_v15 = vsel %vm2713_vm14, %v2645_v13, %v1119_v10  ;;  %v1169_v0 = vstv %s1084_s14  ;;  %vm414_vm10 = vcmp.ge.f32.partialorder %v2307_v62, 0.0  ;;  %vm415_vm11 = vcmp.ge.f32.partialorder %v2309_v63, 0.0 }
  0xd1   : > { %977 = vmatpush.bf16.msra.mxu2 %v942_v61  ;;  %v1128_v19 = vsel %vm1125_vm15, %v1127_v31, %v1123_v15  ;;  %v1166_v60 = vstv %s2731_s12  ;;  %vm416_vm12 = vmand %vm414_vm10, %vm415_vm11  ;;  %vm777_vm14 = vcmp.ge.f32.partialorder %v2398_v23, 0.0  ;;  %vm778_vm15 = vcmp.ge.f32.partialorder %v2400_v24, 0.0 }
  0xd2   : > { %v1130_v52 = vmul.f32 %v1128_v19, %v1094_v8  ;;  %v1135_v32 = vmul.f32 %v1128_v19, %v1104_v9 }
  0xd3   : > { %996 = vmatpush.bf16.msra.mxu3 %v950_v11 }
  0xd4   : > { %978 = vmatmul.bf16.vlgmr.msra.gmra.mxu2 %v966_v14  ;;  %v1132_v13 = vmul.f32 %v1131_v20, %v1130_v52  ;;  %v1137_v22 = vmul.f32 %v1136_v21, %v1135_v32 }
  0xd6   : > { %997 = vmatmul.bf16.vlgmr.msra.gmra.mxu3 %v967_v29  ;;  %v2740_v27 = vadd.f32 %v1133_v33, %v1132_v13  ;;  %v2742_v1 = vadd.f32 %v1138_v34, %v1137_v22  ;;  %v599_v34 = vld [vmem:[%s2161_s30 + $0x20] sm:$0xff]  ;;  %v601_v13 = vld [vmem:[%s2161_s30 + $0x30] sm:$0xff] }
  0xd8   : > { %v1152_v35 = vmax.f32 %v2740_v27, -1.0  ;;  %v1155_v25 = vmax.f32 %v2742_v1, -1.0 }
  0xda   : > { %v1154_v41 = vmin.f32 %v1153_v5, %v1152_v35  ;;  %v1156_v37 = vmin.f32 %v1153_v5, %v1155_v25  ;;  %v600_v35 = vld [vmem:[%s2161_s30 + $0x28] sm:$0xff]  ;;  %v602_v25 = vld [vmem:[%s2161_s30 + $0x38] sm:$0xff] }
  0xdc   : > { %v1158_v44 = vmul.f32 %v1157_v36, %v1154_v41  ;;  %v1160_v42 = vmul.f32 %v1159_v38, %v1156_v37  ;;  %v1165_v45 = vmul.f32 %v1164_v40, %v1154_v41  ;;  %v1167_v48 = vmul.f32 %v1166_v60, %v1156_v37  ;;  %v962_v36 = vld [vmem:[%s2161_s30 + $0x60] sm:$0xff]  ;;  %v964_v41 = vld [vmem:[%s2161_s30 + $0x70] sm:$0xff]  ;;  %v963_v37 = vld [vmem:[%s2161_s30 + $0x68] sm:$0xff] }
  0xde   : > { %v1161_v55 = vadd.f32 %v1160_v42, %v1158_v44  ;;  %v1168_v56 = vadd.f32 %v1167_v48, %v1165_v45  ;;  %v965_v44 = vld [vmem:[%s2161_s30 + $0x78] sm:$0xff] }
  0xe0   : > { %v1163_v26 = vadd.f32 %v1162_v4, %v1161_v55  ;;  %v1170_v49 = vadd.f32 %v1169_v0, %v1168_v56  ;;  %v605_v0 = vpack.c.bf16 %v601_v13, %v599_v34  ;;  %v606_v55 = vpack.c.bf16 %v602_v25, %v600_v35 }
  0xe2   : > { %v1171_v50 = vmul.f32 0.13333334, %v1163_v26  ;;  %v1175_v43 = vmul.f32 0.13333334, %v1170_v49  ;;  %v968_v49 = vpack.c.bf16 %v964_v41, %v962_v36  ;;  %620 = vmatmul.bf16.gmra.mxu0 %v605_v0  ;;  %639 = vmatmul.bf16.gmra.mxu1 %v606_v55 }
  0xe4   : > { %v1658_v47 = vadd.f32 -1.0, %v1171_v50  ;;  %v1660_v51 = vadd.f32 -1.0, %v1175_v43  ;;  %983 = vmatmul.bf16.gmra.mxu2 %v968_v49 }
  0xe6   : > { %v1659_v53 = vclamps-f32 %v1658_v47, 1.1  ;;  %v1661_v16 = vclamps-f32 %v1660_v51, 1.1 }
  0xe8   : > { %v1179_v54 = vadd.f32 1.0, %v1659_v53  ;;  %v1181_v46 = vadd.f32 1.0, %v1661_v16 }
  0xea   : > { %v1180_v57 = vmul.f32 7.5, %v1179_v54  ;;  %v1182_v39 = vmul.f32 7.5, %v1181_v46 }
  0xec   : > { %vm1183_vm0 = vcmp.ne.f32.partialorder %v1180_v57, %v1180_v57  ;;  %vm1185_vm1 = vcmp.ne.f32.partialorder %v1182_v39, %v1182_v39 }
  0xed   : > { %v1184_v58 = vsel %vm1183_vm0, -2.0, %v1180_v57  ;;  %v1186_v2 = vsel %vm1185_vm1, -2.0, %v1182_v39 }
  0xee   : > { %v1187_v18 = vfloor.f32 %v1184_v58  ;;  %v1188_v59 = vfloor.f32 %v1186_v2 }
  0xf0   : > { %v1189_v61 = vsub.f32 %v1184_v58, %v1187_v18  ;;  %v1190_v6 = vsub.f32 %v1186_v2, %v1188_v59  ;;  %v1705_v7 = vcvt.f32.s32 %v1187_v18  ;;  %v1707_v30 = vcvt.f32.s32 %v1188_v59 }
  0xf2   : > { %v1192_v31 = vadd.s32 1, %v1705_v7  ;;  %v1194_v8 = vadd.s32 1, %v1707_v30  ;;  %v1195_v9 = vperm.slane %v1705_v7, 0  ;;  %v1198_v10 = vsub.f32 1.0, %v1189_v61 }
  0xf3   : > { %v1205_v11 = vperm.slane %v1189_v61, 0  ;;  %v1210_v28 = vperm.slane %v1707_v30, 0  ;;  %v1213_v12 = vsub.f32 1.0, %v1190_v6  ;;  %v1220_v14 = vperm.slane %v1190_v6, 0 }
  0xf4   : > { %vm2751_vm2 = vcmp.eq.s32.totalorder %v2371_v3, %v1195_v9  ;;  %vm2756_vm3 = vcmp.eq.s32.totalorder %v2388_v17, %v1195_v9  ;;  %v1199_v20 = vperm.slane %v1198_v10, 0  ;;  %v1202_v21 = vperm.slane %v1192_v31, 0 }
  0xf5   : > { %vm2761_vm4 = vcmp.eq.s32.totalorder %v2371_v3, %v1210_v28  ;;  %v1214_v52 = vperm.slane %v1213_v12, 0  ;;  %v1217_v32 = vperm.slane %v1194_v8, 0  ;;  %vm2766_vm5 = vcmp.eq.s32.totalorder %v2388_v17, %v1210_v28 }
  0xf6   : > { %v1200_v22 = vsel %vm2751_vm2, %v1199_v20, 0.0  ;;  %v1201_v5 = vsel %vm2756_vm3, %v1199_v20, 0.0  ;;  %vm1203_vm6 = vcmp.eq.s32.totalorder %v2371_v3, %v1202_v21  ;;  %vm1204_vm7 = vcmp.eq.s32.totalorder %v2388_v17, %v1202_v21  ;;  %vm779_vm2 = vmand %vm777_vm14, %vm778_vm15 }
  0xf7   : > { %v1206_v38 = vsel %vm1203_vm6, %v1205_v11, 0.0  ;;  %v1207_v40 = vsel %vm1204_vm7, %v1205_v11, 0.0  ;;  %v1215_v60 = vsel %vm2761_vm4, %v1214_v52, 0.0  ;;  %vm1218_vm8 = vcmp.eq.s32.totalorder %v2371_v3, %v1217_v32 }
  0xf8   : > { %v2787_v42 = vadd.f32 %v1206_v38, %v1200_v22  ;;  %v1221_v45 = vsel %vm1218_vm8, %v1220_v14, 0.0  ;;  %v1216_v48 = vsel %vm2766_vm5, %v1214_v52, 0.0  ;;  %vm1219_vm9 = vcmp.eq.s32.totalorder %v2388_v17, %v1217_v32 }
  0xf9   : > { %v2791_v4 = vadd.f32 %v1221_v45, %v1215_v60  ;;  %v2794_v56 = vadd.f32 %v1207_v40, %v1201_v5  ;;  %v1222_v26 = vsel %vm1219_vm9, %v1220_v14, 0.0  ;;  %v969_v3 = vpack.c.bf16 %v965_v44, %v963_v37 }
  0xfa   : > { %v2797_v43 = vadd.f32 %v1222_v26, %v1216_v48  ;;  %vm1140_vm8 = vcmp.ge.f32.partialorder %v2740_v27, 0.0  ;;  %vm1141_vm9 = vcmp.ge.f32.partialorder %v2742_v1, 0.0 }
  0xfb   : > { %v1233_v50 = vrot.slane %v2791_v4, 7  ;;  %v1232_v47 = vrot.slane %v2791_v4, 6  ;;  %v1231_v51 = vrot.slane %v2791_v4, 5  ;;  %1002 = vmatmul.bf16.gmra.mxu3 %v969_v3  ;;  %v1230_v39 = vrot.slane %v2791_v4, 4 }
  0xfc   : > { %v1240_v53 = vrot.slane %v2797_v43, 7  ;;  %v1239_v54 = vrot.slane %v2797_v43, 6  ;;  %v1238_v57 = vrot.slane %v2797_v43, 5  ;;  %v1237_v7 = vrot.slane %v2797_v43, 4 }
  0xfd   : > { %v1248_v17 = vperm.slane %v1233_v50, 0  ;;  %v1247_v16 = vperm.slane %v1232_v47, 0  ;;  %v1246_v46 = vperm.slane %v1231_v51, 0  ;;  %v1229_v12 = vrot.slane %v2791_v4, 3 }
  0xfe   : > { %v1256_v18 = vperm.slane %v1240_v53, 0  ;;  %v1255_v6 = vperm.slane %v1239_v54, 0  ;;  %v1254_v9 = vperm.slane %v1238_v57, 0  ;;  %v1245_v20 = vperm.slane %v1230_v39, 0 }
  0xff   : > { %v1287_v58 = vmul.f32 %v1248_v17, %v2787_v42  ;;  %v1288_v2 = vmul.f32 %v1248_v17, %v2794_v56  ;;  %v1285_v59 = vmul.f32 %v1247_v16, %v2787_v42  ;;  %v1286_v61 = vmul.f32 %v1247_v16, %v2794_v56 }
 0x100   : > { %v1303_v31 = vmul.f32 %v1256_v18, %v2787_v42  ;;  %v1304_v8 = vmul.f32 %v1256_v18, %v2794_v56  ;;  %v1301_v10 = vmul.f32 %v1255_v6, %v2787_v42  ;;  %v1302_v11 = vmul.f32 %v1255_v6, %v2794_v56 }
 0x101   : > { %v1312_v30 = vpack.c.bf16 %v1288_v2, %v1287_v58  ;;  %v1283_v28 = vmul.f32 %v1246_v46, %v2787_v42  ;;  %v1311_v15 = vpack.c.bf16 %v1286_v61, %v1285_v59  ;;  %v1284_v19 = vmul.f32 %v1246_v46, %v2794_v56 }
 0x102   : > { %v1320_v14 = vpack.c.bf16 %v1304_v8, %v1303_v31  ;;  %v1253_v21 = vperm.slane %v1237_v7, 0  ;;  %v1319_v29 = vpack.c.bf16 %v1302_v11, %v1301_v10  ;;  %v1299_v52 = vmul.f32 %v1254_v9, %v2787_v42  ;;  %v1323_v11 = vld [vmem:[%s2161_s30 + $0x90] sm:$0xff] }
 0x103   : > { %1333 = vmatpush.bf16.msrb.mxu0 %v1312_v30  ;;  %1677 = vmatpush.bf16.msrb.mxu2 %v1312_v30  ;;  %v1300_v32 = vmul.f32 %v1254_v9, %v2794_v56  ;;  %v1236_v33 = vrot.slane %v2797_v43, 3  ;;  %v1228_v34 = vrot.slane %v2791_v4, 2  ;;  %v1310_v13 = vpack.c.bf16 %v1284_v19, %v1283_v28  ;;  %v1321_v9 = vld [vmem:[%s2161_s30 + $0x80] sm:$0xff]  ;;  %v1324_v19 = vld [vmem:[%s2161_s30 + $0x98] sm:$0xff] }
 0x104   : > { %1352 = vmatpush.bf16.msrb.mxu1 %v1320_v14  ;;  %1685 = vmatpush.bf16.msrb.mxu3 %v1320_v14  ;;  %v1281_v22 = vmul.f32 %v1245_v20, %v2787_v42  ;;  %v1282_v5 = vmul.f32 %v1245_v20, %v2794_v56  ;;  %v1244_v35 = vperm.slane %v1229_v12, 0  ;;  %v1297_v25 = vmul.f32 %v1253_v21, %v2787_v42  ;;  %v1325_v28 = vld [vmem:[%s2161_s30 + $0xa0] sm:$0xff]  ;;  %v1327_v12 = vld [vmem:[%s2161_s30 + $0xb0] sm:$0xff]  ;;  %v1322_v14 = vld [vmem:[%s2161_s30 + $0x88] sm:$0xff] }
 0x105   : > { %v1298_v36 = vmul.f32 %v1253_v21, %v2794_v56  ;;  %v1318_v38 = vpack.c.bf16 %v1300_v32, %v1299_v52  ;;  %v1252_v40 = vperm.slane %v1236_v33, 0  ;;  %v1235_v60 = vrot.slane %v2797_v43, 2  ;;  %v1326_v20 = vld [vmem:[%s2161_s30 + $0xa8] sm:$0xff]  ;;  %v1328_v21 = vld [vmem:[%s2161_s30 + $0xb8] sm:$0xff]  ;;  %s1695_s30 = smul.u32 96, %s2149_s24 }
 0x106   : > { %v1227_v41 = vrot.slane %v2791_v4, 1  ;;  %v1309_v37 = vpack.c.bf16 %v1282_v5, %v1281_v22  ;;  %v1279_v44 = vmul.f32 %v1244_v35, %v2787_v42  ;;  %v1280_v45 = vmul.f32 %v1244_v35, %v2794_v56 }
 0x107   : > { %1334 = vmatpush.bf16.msrb.mxu0 %v1311_v15  ;;  %1678 = vmatpush.bf16.msrb.mxu2 %v1311_v15  ;;  %v1243_v48 = vperm.slane %v1228_v34, 0  ;;  %v1317_v0 = vpack.c.bf16 %v1298_v36, %v1297_v25  ;;  %v1295_v55 = vmul.f32 %v1252_v40, %v2787_v42  ;;  %v1296_v26 = vmul.f32 %v1252_v40, %v2794_v56 }
 0x108   : > { %1353 = vmatpush.bf16.msrb.mxu1 %v1319_v29  ;;  %1686 = vmatpush.bf16.msrb.mxu3 %v1319_v29  ;;  %v1251_v49 = vperm.slane %v1235_v60, 0  ;;  %v1234_v3 = vrot.slane %v2797_v43, 1  ;;  %v1308_v50 = vpack.c.bf16 %v1280_v45, %v1279_v44  ;;  %v1242_v17 = vperm.slane %v1227_v41, 0 }
 0x109   : > { %v1277_v47 = vmul.f32 %v1243_v48, %v2787_v42  ;;  %v1278_v51 = vmul.f32 %v1243_v48, %v2794_v56  ;;  %v1316_v53 = vpack.c.bf16 %v1296_v26, %v1295_v55  ;;  %v1241_v2 = vperm.slane %v2791_v4, 0 }
 0x10a   : > { %v1293_v16 = vmul.f32 %v1251_v49, %v2787_v42  ;;  %v1294_v54 = vmul.f32 %v1251_v49, %v2794_v56  ;;  %v1250_v46 = vperm.slane %v1234_v3, 0  ;;  %v1275_v39 = vmul.f32 %v1242_v17, %v2787_v42 }
 0x10b   : > { %1335 = vmatpush.bf16.msrb.mxu0 %v1310_v13  ;;  %1679 = vmatpush.bf16.msrb.mxu2 %v1310_v13  ;;  %v1307_v57 = vpack.c.bf16 %v1278_v51, %v1277_v47  ;;  %v1276_v58 = vmul.f32 %v1242_v17, %v2794_v56  ;;  %v1249_v6 = vperm.slane %v2797_v43, 0  ;;  %v1273_v30 = vmul.f32 %v1241_v2, %v2787_v42 }
 0x10c   : > { %1354 = vmatpush.bf16.msrb.mxu1 %v1318_v38  ;;  %1687 = vmatpush.bf16.msrb.mxu3 %v1318_v38  ;;  %v1315_v18 = vpack.c.bf16 %v1294_v54, %v1293_v16  ;;  %v1291_v59 = vmul.f32 %v1250_v46, %v2787_v42  ;;  %v1292_v61 = vmul.f32 %v1250_v46, %v2794_v56  ;;  %v417_v36 = vstv %s2230_s7  ;;  %s1673_s7 = smul.u32 96, %s1991_s18 }
 0x10d   : > { %v1306_v7 = vpack.c.bf16 %v1276_v58, %v1275_v39  ;;  %v1274_v4 = vmul.f32 %v1241_v2, %v2794_v56  ;;  %v1289_v8 = vmul.f32 %v1249_v6, %v2787_v42  ;;  %v1290_v43 = vmul.f32 %v1249_v6, %v2794_v56 }
 0x10e   : > { %v1314_v31 = vpack.c.bf16 %v1292_v61, %v1291_v59  ;;  %v1329_v29 = vpack.c.bf16 %v1323_v11, %v1321_v9  ;;  %v1331_v52 = vpack.c.bf16 %v1327_v12, %v1325_v28  ;;  %v1330_v42 = vpack.c.bf16 %v1324_v19, %v1322_v14  ;;  %s1459_s21 = scalar_lea.hbm %s3093_s3, %s1673_s7 }
 0x10f   : > { %1336 = vmatpush.bf16.msrb.mxu0 %v1309_v37  ;;  %1680 = vmatpush.bf16.msrb.mxu2 %v1309_v37  ;;  %v1305_v10 = vpack.c.bf16 %v1274_v4, %v1273_v30  ;;  %v1313_v15 = vpack.c.bf16 %v1290_v43, %v1289_v8  ;;  %v1332_v56 = vpack.c.bf16 %v1328_v21, %v1326_v20  ;;  %v420_v60 = vstv %s2235_s1  ;;  %s2976_s1 = scalar_lea.vmem [#allocation9], %s1695_s30  ;;  %s1462_s28 = sshll.u32 %s1459_s21, 4  ;;  %s3020_s28 = int_to_ptr.hbm [resolvable:$true] %s1462_s28 }
 0x110   : > { %1355 = vmatpush.bf16.msrb.mxu1 %v1317_v0  ;;  %1688 = vmatpush.bf16.msrb.mxu3 %v1317_v0  ;;  %vm418_vm13 = vcmp.lt.f32.partialorder %v2307_v62, %v417_v36  ;;  %v780_v41 = vstv %s2353_s17  ;;  %vm421_vm1 = vcmp.lt.f32.partialorder %v2309_v63, %v420_v60  ;;  %v783_v45 = vstv %s2359_s23  ;;  %s1460_s13 = sshll.u32 %s2976_s1, 4  ;;  %s1891_s5 = sshra.s32 %s3020_s28, 4  ;;  %s3018_s13 = int_to_ptr.vmem [resolvable:$true] %s1460_s13  ;;  %s1892_s5 = int_to_ptr.hbm [resolvable:$true] %s1891_s5 }
 0x111   : > { %vm419_vm0 = vmand %vm416_vm12, %vm418_vm13  ;;  %vm781_vm3 = vcmp.lt.f32.partialorder %v2398_v23, %v780_v41  ;;  %vm784_vm6 = vcmp.lt.f32.partialorder %v2400_v24, %v783_v45  ;;  %v2004_v0 = vmov 0.0   ;;  %v1146_v30 = vstv %s2702_s10  ;;  %s1893_s19 = scalar_lea.hbm %s1892_s5, 96  ;;  %p1898_p10 = scmp.lt.s32.totalorder %s1892_s5, %s3093_s3 }
 0x112   : > { %vm422_vm4 = vmand %vm419_vm0, %vm421_vm1  ;;  %p1894_p1 = scmp.ne.s32.totalorder %s1892_s5, %s1893_s19  ;;  %p1899_p11 = scmp.lt.s32.totalorder %s1897_s25, %s1893_s19 }
 0x113   : > { %1337 = vmatpush.bf16.msrb.mxu0 %v1308_v50  ;;  %1681 = vmatpush.bf16.msrb.mxu2 %v1308_v50  ;;  %vm782_vm5 = vmand %vm779_vm2, %vm781_vm3  ;;  %v2867_v55 = vsel %vm422_vm4, 1.0, %v2004_v0  ;;  %vm1147_vm2 = vcmp.lt.f32.partialorder %v2742_v1, %v1146_v30 }
 0x114   : > { %1356 = vmatpush.bf16.msrb.mxu1 %v1316_v53  ;;  %1689 = vmatpush.bf16.msrb.mxu3 %v1316_v53  ;;  %vm785_vm7 = vmand %vm782_vm5, %vm784_vm6  ;;  %v645_v50 = vperm.slane %v2867_v55, 0  ;;  %p1895_p4 = pnand %p1894_p1, %p2110_p9  ;;  %p1900_p12 = por %p1899_p11, %p1898_p10 }
 0x115   : > { %v2871_v23 = vsel %vm785_vm7, 1.0, %v2004_v0  ;;  %vm2895_vm12 = vmand %vm1140_vm8, %vm1141_vm9 }
 0x116   : > { %v1008_v16 = vperm.slane %v2871_v23, 0  ;;  %p1896_p8 = pneg %p1895_p4 }
 0x117   : > { %1338 = vmatpush.bf16.msrb.mxu0 %v1307_v57  ;;  %1682 = vmatpush.bf16.msrb.mxu2 %v1307_v57  ;;  %v1143_v57 = vstv %s2698_s26  ;;  %s3163_s26 = sshll.u32 %s2149_s24, 3 }
 0x118   : > { %1357 = vmatpush.bf16.msrb.mxu1 %v1315_v18  ;;  %1690 = vmatpush.bf16.msrb.mxu3 %v1315_v18  ;;  %vm2900_vm13 = vcmp.lt.f32.partialorder %v2740_v27, %v1143_v57  ;;  %s3028_s9 = scalar_lea.vmem [#allocation10], %s3163_s26  ;;  %p1901_p13 = pnand %p1900_p12, %p1896_p8 }
 0x119   : > { %vm1145_vm1 = vmand %vm2895_vm12, %vm2900_vm13  ;;  %s1478_s10 = sshll.u32 %s3028_s9, 4  ;;  %s3034_s10 = int_to_ptr.vmem [resolvable:$true] %s1478_s10 }
 0x11a   : > { %vm1148_vm6 = vmand %vm1145_vm1, %vm1147_vm2 }
 0x11b   : > { %1339 = vmatpush.bf16.msrb.mxu0 %v1306_v7  ;;  %1683 = vmatpush.bf16.msrb.mxu2 %v1306_v7  ;;  %v2933_v20 = vsel %vm1148_vm6, 1.0, %v2004_v0 }
 0x11c   : > { %1358 = vmatpush.bf16.msrb.mxu1 %v1314_v31  ;;  %1691 = vmatpush.bf16.msrb.mxu3 %v1314_v31 }
 0x11f   : > { %1340 = vmatpush.bf16.msrb.mxu0 %v1305_v10  ;;  %1684 = vmatpush.bf16.msrb.mxu2 %v1305_v10 }
 0x120   : > { %1359 = vmatpush.bf16.msrb.mxu1 %v1313_v15  ;;  %1692 = vmatpush.bf16.msrb.mxu3 %v1313_v15 }
 0x122   : > { %1341 = vmatmul.bf16.vlgmr.msrb.gmra.mxu0 %v1329_v29  ;;  %1346 = vmatmul.bf16.vlgmr.msrb.gmra.mxu2 %v1331_v52 }
 0x123   : > { %1360 = vmatmul.bf16.vlgmr.msrb.gmra.mxu1 %v1330_v42  ;;  %1365 = vmatmul.bf16.vlgmr.msrb.gmra.mxu3 %v1332_v56 }
 0x147   : > { %v616_v32 = vpop.f32.mrf.mxu0 }
 0x149   : > { %v635_v33 = vpop.f32.mrf.mxu1 }
 0x14a   : > { %v636_v47 = vadd.f32 %v635_v33, %v616_v32 }
 0x14c   : > { %v2881_v39 = vmul.f32 %v645_v50, %v636_v47 }
 0x14e   : > { %vm650_vm14 = vcmp.ne.f32.partialorder %v2881_v39, %v2881_v39 }
 0x14f   : > { %v618_v22 = vpop.f32.mrf.mxu0  ;;  %v654_v43 = vsel %vm650_vm14, 1.0, %v2004_v0 }
 0x151   : > { %v637_v5 = vpop.f32.mrf.mxu1 }
 0x152   : > { %v638_v51 = vadd.f32 %v637_v5, %v618_v22 }
 0x154   : > { %v2883_v2 = vmul.f32 %v645_v50, %v638_v51 }
 0x156   : > { %vm651_vm15 = vcmp.ne.f32.partialorder %v2883_v2, %v2883_v2 }
 0x157   : > { %v979_v34 = vpop.f32.mrf.mxu2  ;;  %v655_v9 = vsel %vm651_vm15, 1.0, %v2004_v0 }
 0x158   : > { %v658_v14 = vmax.f32 %v654_v43, %v655_v9 }
 0x159   : > { %v998_v13 = vpop.f32.mrf.mxu3 }
 0x15a   : > { %v999_v58 = vadd.f32 %v998_v13, %v979_v34  ;;  %v1371_v34 = vperm.slane %v2933_v20, 0 }
 0x15c   : > { %v2907_v4 = vmul.f32 %v1008_v16, %v999_v58 }
 0x15e   : > { %vm1013_vm5 = vcmp.ne.f32.partialorder %v2907_v4, %v2907_v4 }
 0x15f   : > { %v981_v35 = vpop.f32.mrf.mxu2  ;;  %v621_v38 = vpop.f32.mrf.mxu0  ;;  %v1017_v19 = vsel %vm1013_vm5, 1.0, %v2004_v0 }
 0x160   : > { %v640_v40 = vpop.f32.mrf.mxu1 }
 0x161   : > { %v1000_v25 = vpop.f32.mrf.mxu3  ;;  %v641_v26 = vadd.f32 %v640_v40, %v621_v38 }
 0x162   : > { %v1001_v17 = vadd.f32 %v1000_v25, %v981_v35 }
 0x163   : > { %v2873_v53 = vmul.f32 %v645_v50, %v641_v26 }
 0x164   : > { %v2887_v59 = vmul.f32 %v1008_v16, %v1001_v17 }
 0x165   : > { %vm652_vm10 = vcmp.ne.f32.partialorder %v2873_v53, %v2873_v53 }
 0x166   : > { %v656_v31 = vsel %vm652_vm10, 1.0, %v2004_v0  ;;  %vm1014_vm3 = vcmp.ne.f32.partialorder %v2887_v59, %v2887_v59 }
 0x167   : > { %v984_v37 = vpop.f32.mrf.mxu2  ;;  %v623_v62 = vpop.f32.mrf.mxu0  ;;  %v1018_v1 = vsel %vm1014_vm3, 1.0, %v2004_v0 }
 0x168   : > { %v642_v48 = vpop.f32.mrf.mxu1  ;;  %v1021_v29 = vmax.f32 %v1017_v19, %v1018_v1 }
 0x169   : > { %v643_v63 = vadd.f32 %v642_v48, %v623_v62 }
 0x16b   : > { %v2876_v46 = vmul.f32 %v645_v50, %v643_v63 }
 0x16d   : > { %vm653_vm11 = vcmp.ne.f32.partialorder %v2876_v46, %v2876_v46 }
 0x16e   : > { %v657_v8 = vsel %vm653_vm11, 1.0, %v2004_v0 }
 0x16f   : > { %v986_v49 = vpop.f32.mrf.mxu2  ;;  %v659_v28 = vmax.f32 %v656_v31, %v657_v8 }
 0x171   : > { %v660_v52 = vmax.f32 %v658_v14, %v659_v28 }
 0x173   : > { %v661_v22 = vrot.slane %v660_v52, 4 }
 0x175   : > { %v662_v60 = vmax.f32 %v660_v52, %v661_v22 }
 0x177   : > { %v663_v62 = vrot.slane %v662_v60, 2 }
 0x179   : > { %v664_v47 = vmax.f32 %v662_v60, %v663_v62 }
 0x17e   : > { %v1003_v44 = vpop.f32.mrf.mxu3 }
 0x17f   : > { %v1004_v54 = vadd.f32 %v1003_v44, %v984_v37 }
 0x181   : > { %v2891_v61 = vmul.f32 %v1008_v16, %v1004_v54  ;;  %v665_v54 = vrot.slane %v664_v47, 1 }
 0x183   : > { %vm1015_vm4 = vcmp.ne.f32.partialorder %v2891_v61, %v2891_v61  ;;  %v666_v7 = vmax.f32 %v664_v47, %v665_v54 }
 0x184   : > { %v1019_v12 = vsel %vm1015_vm4, 1.0, %v2004_v0 }
 0x186   : > { %v1005_v3 = vpop.f32.mrf.mxu3 }
 0x187   : > { %v1006_v24 = vadd.f32 %v1005_v3, %v986_v49 }
 0x189   : > { %v2885_v18 = vmul.f32 %v1008_v16, %v1006_v24 }
 0x18b   : > { %vm1016_vm0 = vcmp.ne.f32.partialorder %v2885_v18, %v2885_v18 }
 0x18c   : > { %v1020_v10 = vsel %vm1016_vm0, 1.0, %v2004_v0 }
 0x18d   : > { %v1022_v15 = vmax.f32 %v1019_v12, %v1020_v10  ;;  %v668_v10 = vmax.f32 %v2867_v55, 0.0 }
 0x18f   : > { %v1023_v32 = vmax.f32 %v1021_v29, %v1022_v15  ;;  %v1031_v1 = vmax.f32 %v668_v10, %v2871_v23 }
 0x191   : > { %v1024_v25 = vrot.slane %v1023_v32, 4 }
 0x193   : > { %v1025_v44 = vmax.f32 %v1023_v32, %v1024_v25 }
 0x195   : > { %v1026_v3 = vrot.slane %v1025_v44, 2 }
 0x197   : > { %v1027_v17 = vmax.f32 %v1025_v44, %v1026_v3 }
 0x199   : > { %v1028_v58 = vrot.slane %v1027_v17, 1 }
 0x19b   : > { %v1029_v31 = vmax.f32 %v1027_v17, %v1028_v58 }
 0x19f   : > { %v1342_v27 = vpop.f32.mrf.mxu0 }
 0x1a0   : > { %v1361_v11 = vpop.f32.mrf.mxu1 }
 0x1a1   : > { %v1362_v33 = vadd.f32 %v1361_v11, %v1342_v27  ;;  %v667_v27 = vmax.f32 %v666_v7, 0.0 }
 0x1a3   : > { %v2936_v36 = vmul.f32 %v1371_v34, %v1362_v33  ;;  %v1030_v9 = vmax.f32 %v667_v27, %v1029_v31 }
 0x1a5   : > { %v1347_v21 = vpop.f32.mrf.mxu2  ;;  %vm1376_vm7 = vcmp.ne.f32.partialorder %v2936_v36, %v2936_v36 }
 0x1a6   : > { %v1366_v42 = vpop.f32.mrf.mxu3  ;;  %v1380_v26 = vsel %vm1376_vm7, 1.0, %v2004_v0 }
 0x1a7   : > { %v1344_v56 = vpop.f32.mrf.mxu0  ;;  %v1367_v5 = vadd.f32 %v1366_v42, %v1347_v21 }
 0x1a8   : > { %v1363_v13 = vpop.f32.mrf.mxu1 }
 0x1a9   : > { %v1364_v35 = vadd.f32 %v1363_v13, %v1344_v56  ;;  %v2940_v41 = vmul.f32 %v1371_v34, %v1367_v5 }
 0x1ab   : > { %v2938_v38 = vmul.f32 %v1371_v34, %v1364_v35  ;;  %vm1378_vm9 = vcmp.ne.f32.partialorder %v2940_v41, %v2940_v41 }
 0x1ac   : > { %v1382_v63 = vsel %vm1378_vm9, 1.0, %v2004_v0 }
 0x1ad   : > { %v1349_v40 = vpop.f32.mrf.mxu2  ;;  %vm1377_vm8 = vcmp.ne.f32.partialorder %v2938_v38, %v2938_v38 }
 0x1ae   : > { %v1368_v37 = vpop.f32.mrf.mxu3  ;;  %v1381_v49 = vsel %vm1377_vm8, 1.0, %v2004_v0 }
 0x1af   : > { %v1369_v45 = vadd.f32 %v1368_v37, %v1349_v40  ;;  %v1384_v51 = vmax.f32 %v1380_v26, %v1381_v49 }
 0x1b1   : > { %v2948_v48 = vmul.f32 %v1371_v34, %v1369_v45 }
 0x1b3   : > { %vm1379_vm10 = vcmp.ne.f32.partialorder %v2948_v48, %v2948_v48 }
 0x1b4   : > { %v1383_v50 = vsel %vm1379_vm10, 1.0, %v2004_v0 }
 0x1b5   : > { %v1385_v24 = vmax.f32 %v1382_v63, %v1383_v50 }
 0x1b7   : > { %v1386_v16 = vmax.f32 %v1384_v51, %v1385_v24 }
 0x1b9   : > { %v1387_v57 = vrot.slane %v1386_v16, 4 }
 0x1bb   : > { %v1388_v6 = vmax.f32 %v1386_v16, %v1387_v57 }
 0x1bd   : > { %v1389_v30 = vrot.slane %v1388_v6, 2 }
 0x1bf   : > { %v1390_v8 = vmax.f32 %v1388_v6, %v1389_v30 }
 0x1c1   : > { %v1391_v43 = vrot.slane %v1390_v8, 1 }
 0x1c3   : > { %v1392_v0 = vmax.f32 %v1390_v8, %v1391_v43 }
 0x1c5   : > { %v1393_v11 = vmax.f32 %v1030_v9, %v1392_v0 }
 0x1c7   : > { %vm2959_vm11 = vcmp.gt.f32.partialorder %v1393_v11, 0.0 }
 0x1c8   : > { %v1406_v12 = vsel %vm2959_vm11, 0.0, %v2881_v39  ;;  %v1407_v14 = vsel %vm2959_vm11, 0.0, %v2883_v2  ;;  %v1408_v55 = vsel %vm2959_vm11, 0.0, %v2873_v53  ;;  %v1409_v15 = vsel %vm2959_vm11, 0.0, %v2876_v46 }
 0x1c9   : > { %1410 = vst [vmem:[%s2976_s1] sm:$0xff] %v1406_v12  ;;  %v1418_v23 = vsel %vm2959_vm11, 0.0, %v2907_v4  ;;  %v1419_v53 = vsel %vm2959_vm11, 0.0, %v2887_v59  ;;  %v1394_v46 = vmax.f32 %v1031_v1, %v2933_v20  ;;  %v1420_v39 = vsel %vm2959_vm11, 0.0, %v2891_v61 }
 0x1ca   : > { %1411 = vst [vmem:[%s2976_s1 + $0x8] sm:$0xff] %v1407_v14  ;;  %v1421_v2 = vsel %vm2959_vm11, 0.0, %v2885_v18  ;;  %v1430_v59 = vsel %vm2959_vm11, 0.0, %v2936_v36  ;;  %v1431_v18 = vsel %vm2959_vm11, 0.0, %v2938_v38  ;;  %v1432_v4 = vsel %vm2959_vm11, 0.0, %v2940_v41 }
 0x1cb   : > { %1412 = vst [vmem:[%s2976_s1 + $0x10] sm:$0xff] %v1408_v55  ;;  %v1438_v61 = vsel %vm2959_vm11, 0.0, %v1394_v46  ;;  %v1433_v19 = vsel %vm2959_vm11, 0.0, %v2948_v48 }
 0x1cc   : > { %1413 = vst [vmem:[%s2976_s1 + $0x18] sm:$0xff] %v1409_v15  ;;  %v1439_v20 = vperm.slane %v1438_v61, 0 }
 0x1cd   : > { %1422 = vst [vmem:[%s2976_s1 + $0x20] sm:$0xff] %v1418_v23 }
 0x1ce   : > { %1423 = vst [vmem:[%s2976_s1 + $0x28] sm:$0xff] %v1419_v53 }
 0x1cf   : > { %1424 = vst [vmem:[%s2976_s1 + $0x30] sm:$0xff] %v1420_v39 }
 0x1d0   : > { %1425 = vst [vmem:[%s2976_s1 + $0x38] sm:$0xff] %v1421_v2 }
 0x1d1   : > { %1434 = vst [vmem:[%s2976_s1 + $0x40] sm:$0xff] %v1430_v59 }
 0x1d2   : > { %1435 = vst [vmem:[%s2976_s1 + $0x48] sm:$0xff] %v1431_v18 }
 0x1d3   : > { %1436 = vst [vmem:[%s2976_s1 + $0x50] sm:$0xff] %v1432_v4 }
 0x1d4   : > { %1437 = vst [vmem:[%s2976_s1 + $0x58] sm:$0xff] %v1433_v19 }
 0x1d5   : > { %1904 = shalt.err (!%p1901_p13)
}
 0x1d6   : > { %s2005_s2 = smov 128   ;;  %s2006_s11 = smov 8   ;;  %1440 = vst [vmem:[%s3028_s9] sm:$0xff] %v1439_v20 }
 0x1d7   : > { %1716 = dma.vmem_to_hbm [thread:$0]  (%p2110_p9), %s3018_s13, 1536, %s3020_s28, %s1442_s27, %s2005_s2, %s2005_s2, %s2006_s11  }
 0x1d8   : > { %s1447_s14 = scalar_lea.sflag [#allocation11], %s2149_s24  ;;  %s1919_s30 = sshra.s32 %s3036_s15, 4  ;;  %s1920_s30 = int_to_ptr.hbm [resolvable:$true] %s1919_s30 }
 0x1d9   : > { %s1921_s7 = scalar_lea.hbm %s1920_s30, 8  ;;  %s1925_s23 = scalar_lea.hbm %s3094_s4, 16 }
 0x1da   : > { %p1922_p0 = scmp.ne.s32.totalorder %s1920_s30, %s1921_s7  ;;  %p1926_p7 = scmp.lt.s32.totalorder %s1920_s30, %s3094_s4 }
 0x1db   : > { %p1927_p2 = scmp.lt.s32.totalorder %s1925_s23, %s1921_s7 }
 0x1dc   : > { %p1923_p3 = pnand %p1922_p0, %p2110_p9 }
 0x1dd   : > { %p1928_p1 = por %p1927_p2, %p1926_p7 }
 0x1de   : > { %p1924_p5 = pneg %p1923_p3 }
 0x1e0   : > { %p1929_p4 = pnand %p1928_p1, %p1924_p5 }
 0x1e2   : > { %1932 = shalt.err (!%p1929_p4)
}
 0x1e3   : > { %1717 = dma.vmem_to_hbm [thread:$0]  (%p2110_p9), %s3034_s10, 128, %s3036_s15, %s1447_s14  }
 0x1e4 PF: > { %s3164_s24 = sld [smem:[#allocation17_spill]] }
 0x1e5   : > { %s3166_s28 = sld [smem:[#allocation21_spill]] }
 0x1ea   : > { %s1492_s18 = sand.u32 1, %s3164_s24  }
 0x1eb   : > { %p3167_p8 = scmp.ge.s32.totalorder %s3166_s28, 2  ;;  %s1493_s20 = scalar_lea.sflag [#allocation4], %s1492_s18 }
 0x1ed   : > { %p1732_p10 = pnand %p3167_p8, %p2081_p6 }
 0x1ef   : > { %p1733_p11 = pneg %p1732_p10 }
 0x1f1   : > { %1970 = dma.done.wait (%p1733_p11), %s1493_s20, 1536  }
 0x1f2   : > { %1972 = vsyncadd (%p1733_p11), %s1493_s20, 4294965760  ;;  %s1503_s16 = scalar_lea.sflag [#allocation11], %s1492_s18 }
 0x1f3   : > { %1974 = dma.done.wait (%p1733_p11), %s1503_s16, 128  }
 0x1f4   : > { %1976 = vsyncadd (%p1733_p11), %s1503_s16, 4294967168  ;;  %s28_s20 = sadd.s32 1, %s3166_s28   ;;  %s3168_s15 = sld [smem:[#allocation18_spill]] }
 0x1f5   : > { %p25_p12 = scmp.ge.s32.totalorder %s28_s20, 4   ;;  %s3169_s16 = sld [smem:[#allocation19_spill]] }
 0x1f6   : > { %s3170_s17 = sld [smem:[#allocation25_spill]] }
 0x1f7   : > { %s3171_s18 = sld [smem:[#allocation20_spill]]  ;;  %27 = sbr.rel (!%p25_p12) target bundleno = 15 (0xf), region = 112 }
 0x1f8   : > { %s3172_s19 = sld [smem:[#allocation23_spill]] }
 0x1fc   :  { %1509 = vsyncpa [#allocation3], 1 }
 0x1fd   :  { %1511 = vsyncpa [#allocation3 + $0x1], 1 }
 0x1fe   :  { %1512 = vsyncpa [#allocation8], 1 }
 0x1ff   :  { %1514 = vsyncpa [#allocation8 + $0x1], 1 }
 0x200   :  { %1515 = vsyncpa [#allocation4], 1 }
 0x201   :  { %1517 = vsyncpa [#allocation4 + $0x1], 1 }
 0x202   :  { %1518 = vsyncpa [#allocation11], 1 }
 0x203   :  { %1520 = vsyncpa [#allocation11 + $0x1], 1 }
 0x204   :  { %1521 = vsyncpa [#allocation5], 1 }
 0x205   :  { %1523 = vsyncpa [#allocation5 + $0x1], 1 }

</bundles_post_ra>
